<compile_context>
chip_gen: v7x
topology: tpu7x:2x2x1
jax: 0.10.0
libtpu: 0.0.40
codegen_flags: <defaults>
</compile_context>

<pallas_src>
import jax
import jax.numpy as jnp
from jax.experimental import pallas as pl
from jax.experimental.pallas import tpu as pltpu

WEIGHT = 1.0                 # PointNetLoss(weight=1)
MAT_DIFF_LOSS_SCALE = 0.001  # PointNetLoss(mat_diff_loss_scale=0.001)

NCORES = 2                   # leading "parallel" grid axis (v7x: 2 TensorCores)
LANE = 128


def _round_up(x, m):
    return ((x + m - 1) // m) * m


def _pointnet_loss_kernel(labels_pred_ref, label_ref, segp_ref, seg_ref, trans_ref,
                          out_ref):
    c = pl.program_id(0)      # core (parallel) index
    s = pl.program_id(1)      # N-tile (reduction) index

    # ---- per-tile NLL partial sum: sum_i seg_pred[seg[i], i]  (points on lanes) ----
    x = segp_ref[...].astype(jnp.float32)                      # (C, TILE_N)
    lab = seg_ref[...]                                         # (1, TILE_N) int32
    cls = jax.lax.broadcasted_iota(jnp.int32, x.shape, 0)      # class id on sublanes
    picked = jnp.where(cls == lab, x, 0.0)                     # one-hot gather
    tile_sum = jnp.sum(picked, keepdims=True)                  # (1, 1) f32

    @pl.when(s == 0)
    def _init():
        # This core's output block just became resident: clear it.
        out_ref[...] = jnp.zeros_like(out_ref)

    @pl.when(jnp.logical_and(s == 0, c == 0))
    def _small_terms():
        # --- label_loss = F.cross_entropy(labels_pred, label) ---
        logits = labels_pred_ref[...].astype(jnp.float32)      # (B, K)
        label = label_ref[...]                                 # (B, 1) int32
        b, k = logits.shape
        mx = jnp.max(logits, axis=1, keepdims=True)
        lse = mx + jnp.log(jnp.sum(jnp.exp(logits - mx), axis=1, keepdims=True))
        kk = jax.lax.broadcasted_iota(jnp.int32, (b, k), 1)
        hit = jnp.sum(jnp.where(kk == label, logits, 0.0), axis=1, keepdims=True)
        out_ref[0:1, 1:2] = jnp.sum(lse - hit, keepdims=True) / b

        # --- mat_diff_loss = mean_b || T_b @ (T_b^T - I) ||_F == || T T^T - T ||_F ---
        trans = trans_ref[...].astype(jnp.float32)             # (Bt, d, d)
        bt = trans.shape[0]
        tt = jax.lax.dot_general(
            trans, trans,
            dimension_numbers=(((2,), (2,)), ((0,), (0,))),
            preferred_element_type=jnp.float32)                # T @ T^T
        m = tt - trans
        fro = jnp.sqrt(jnp.sum(jnp.sum(m * m, axis=2), axis=1, keepdims=True))  # (Bt,1)
        out_ref[0:1, 2:3] = jnp.sum(fro, keepdims=True) / bt

    # Accumulate this core's NLL partial sum in its resident output block.
    out_ref[0:1, 0:1] += tile_sum


@jax.jit
def pointnet_loss(labels_pred, label, seg_pred, seg, trans_feat):
    """Returns (loss, seg_loss, label_loss) as scalar f32, matching PointNetLoss.forward."""
    n, c_cls = seg_pred.shape

    # Lane-dense tile size (points on lanes); budget ~2 MiB f32 per seg_pred block,
    # well under v7x's 64 MiB physical / 32 MiB default-scoped VMEM after
    # double-buffering, and big enough to amortize per-grid-step overhead.
    c_pad = _round_up(c_cls, 8)
    tile_n_max = max(LANE, ((2 * 1024 * 1024) // (4 * c_pad)) // LANE * LANE)
    steps = pl.cdiv(n, NCORES * tile_n_max)
    tile_n = _round_up(pl.cdiv(n, NCORES * steps), LANE)
    n_pad = NCORES * steps * tile_n

    # Lane-dense presentation: (C, N_pad) log-probs and (1, N_pad) labels.
    # Zero padding is self-masking: pad label 0 selects a 0.0 log-prob -> adds 0.
    segp_t = jnp.pad(seg_pred.T, ((0, 0), (0, n_pad - n)))           # keep input dtype
    seg2d = jnp.pad(seg.astype(jnp.int32).reshape(1, -1), ((0, 0), (0, n_pad - n)))
    label2d = label.astype(jnp.int32).reshape(-1, 1)

    out = pl.pallas_call(
        _pointnet_loss_kernel,
        out_shape=jax.ShapeDtypeStruct((NCORES * 8, 128), jnp.float32),
        grid=(NCORES, steps),
        in_specs=[
            pl.BlockSpec(labels_pred.shape, lambda c, s: (0, 0)),        # (B, K), once
            pl.BlockSpec(label2d.shape, lambda c, s: (0, 0)),            # (B, 1), once
            pl.BlockSpec((c_cls, tile_n), lambda c, s: (0, c * steps + s)),
            pl.BlockSpec((1, tile_n), lambda c, s: (0, c * steps + s)),
            pl.BlockSpec(trans_feat.shape, lambda c, s: (0, 0, 0)),      # (Bt,d,d), once
        ],
        out_specs=pl.BlockSpec((8, 128), lambda c, s: (c, 0)),           # per-core block
        compiler_params=pltpu.CompilerParams(
            dimension_semantics=("parallel", "arbitrary"),
            vmem_limit_bytes=32 * 1024 * 1024,
        ),
    )(labels_pred, label2d, segp_t, seg2d, trans_feat)

    # Combine the handful of scalars (per-core partials + tiny terms).
    seg_sum = jnp.sum(out[::8, 0])
    seg_loss = -seg_sum / n
    label_loss = out[0, 1]
    mat_diff_loss = out[0, 2]
    loss = (WEIGHT * seg_loss + (1.0 - WEIGHT) * label_loss
            + mat_diff_loss * MAT_DIFF_LOSS_SCALE)
    return loss, seg_loss, label_loss


def _reference(labels_pred, label, seg_pred, seg, trans):
    """Plain-JAX reference mirroring the PyTorch module."""
    n = seg_pred.shape[0]
    seg_loss = -jnp.mean(seg_pred[jnp.arange(n), seg])
    lse = jax.nn.logsumexp(labels_pred, axis=1)
    b = labels_pred.shape[0]
    label_loss = jnp.mean(lse - labels_pred[jnp.arange(b), label])
    d = trans.shape[1]
    eye = jnp.eye(d, dtype=trans.dtype)
    m = jnp.einsum('bij,bjk->bik', trans, jnp.swapaxes(trans, 1, 2) - eye)
    mat_diff = jnp.mean(jnp.sqrt(jnp.sum(m * m, axis=(1, 2))))
    loss = WEIGHT * seg_loss + (1.0 - WEIGHT) * label_loss + mat_diff * MAT_DIFF_LOSS_SCALE
    return loss, seg_loss, label_loss


if __name__ == "__main__":
    key = jax.random.PRNGKey(0)
    k1, k2, k3, k4, k5 = jax.random.split(key, 5)

    B, K = 8, 16      # classification batch / #classes
    N, C = 128, 8     # flattened (batch * points) / #seg classes
    D = 64            # feature-transform dimension

    labels_pred = jax.random.normal(k1, (B, K), jnp.float32)           # raw logits
    label = jax.random.randint(k2, (B,), 0, K, jnp.int32)
    seg_logits = jax.random.normal(k3, (N, C), jnp.float32)
    seg_pred = jax.nn.log_softmax(seg_logits, axis=-1)                  # nll_loss expects log-probs
    seg = jax.random.randint(k4, (N,), 0, C, jnp.int32)
    trans_feat = 0.1 * jax.random.normal(k5, (B, D, D), jnp.float32)

    outs = pointnet_loss(labels_pred, label, seg_pred, seg, trans_feat)
    outs = jax.block_until_ready(outs)

    ref = _reference(labels_pred, label, seg_pred, seg, trans_feat)
    for got, want in zip(outs, ref):
        assert jnp.allclose(got, want, rtol=1e-4, atol=1e-4), (got, want)

    print("KERNEL_OK")
</pallas_src>

<mosaic_0001>
module attributes {stable_mosaic.version = 11 : i64} {
  func.func @_pointnet_loss_kernel(%arg0: i32, %arg1: i32, %arg2: memref<8x16xf32, #tpu.memory_space<vmem>>, %arg3: memref<8x1xi32, #tpu.memory_space<vmem>>, %arg4: memref<8x128xf32, #tpu.memory_space<vmem>>, %arg5: memref<1x128xi32, #tpu.memory_space<vmem>>, %arg6: memref<8x64x64xf32, #tpu.memory_space<vmem>>, %arg7: memref<8x128xf32, #tpu.memory_space<vmem>>) attributes {dimension_semantics = [#tpu.dimension_semantics<parallel>, #tpu.dimension_semantics<arbitrary>], iteration_bounds = array<i64: 2, 1>, scalar_prefetch = 0 : i64, scratch_operands = 0 : i64, tpu.core_type = #tpu.core_type<tc>, window_params = [{pipeline_mode = #tpu.pipeline_mode<synchronous>, transform_indices = @transform_0, window_bounds = array<i64: 8, 16>}, {pipeline_mode = #tpu.pipeline_mode<synchronous>, transform_indices = @transform_1, window_bounds = array<i64: 8, 1>}, {transform_indices = @transform_2, window_bounds = array<i64: 8, 128>}, {transform_indices = @transform_3, window_bounds = array<i64: 1, 128>}, {pipeline_mode = #tpu.pipeline_mode<synchronous>, transform_indices = @transform_4, window_bounds = array<i64: 8, 64, 64>}, {transform_indices = @transform_5, window_bounds = array<i64: 8, 128>}]} {
    %c0 = arith.constant 0 : index
    %c0_0 = arith.constant 0 : index
    %0 = vector.load %arg4[%c0, %c0_0] : memref<8x128xf32, #tpu.memory_space<vmem>>, vector<8x128xf32>
    %c0_1 = arith.constant 0 : index
    %c0_2 = arith.constant 0 : index
    %1 = vector.load %arg5[%c0_1, %c0_2] : memref<1x128xi32, #tpu.memory_space<vmem>>, vector<1x128xi32>
    %2 = tpu.iota {dimensions = array<i32: 0>} : vector<8x128xi32>
    %3 = vector.broadcast %1 : vector<1x128xi32> to vector<8x128xi32>
    %4 = arith.cmpi eq, %2, %3 : vector<8x128xi32>
    %cst = arith.constant 0.000000e+00 : f32
    %5 = vector.broadcast %cst : f32 to vector<8x128xf32>
    %6 = arith.select %4, %0, %5 : vector<8x128xi1>, vector<8x128xf32>
    %7 = vector.shape_cast %6 : vector<8x128xf32> to vector<1x8x128xf32>
    %cst_3 = arith.constant dense<0.000000e+00> : vector<1xf32>
    %8 = vector.multi_reduction <add>, %7, %cst_3 [1, 2] : vector<1x8x128xf32> to vector<1xf32>
    %9 = vector.shape_cast %8 : vector<1xf32> to vector<1x1x1xf32>
    %10 = vector.extract %9[0, 0, 0] : f32 from vector<1x1x1xf32>
    %11 = vector.broadcast %10 : f32 to vector<1x1xf32>
    %c0_i32 = arith.constant 0 : i32
    %12 = arith.cmpi eq, %arg1, %c0_i32 : i32
    %13 = arith.extui %12 : i1 to i32
    %c0_i32_4 = arith.constant 0 : i32
    %14 = arith.cmpi ne, %13, %c0_i32_4 : i32
    scf.if %14 {
      %cst_12 = arith.constant 0.000000e+00 : f32
      %23 = vector.broadcast %cst_12 : f32 to vector<8x128xf32>
      %c0_13 = arith.constant 0 : index
      %c0_14 = arith.constant 0 : index
      %24 = vector.load %arg7[%c0_13, %c0_14] : memref<8x128xf32, #tpu.memory_space<vmem>>, vector<8x128xf32>
      tpu.vector_store %arg7[%c0_13, %c0_14], %23 {strides = array<i32>} : memref<8x128xf32, #tpu.memory_space<vmem>>, vector<8x128xf32>,
    } else {
    }
    %c0_i32_5 = arith.constant 0 : i32
    %15 = arith.cmpi eq, %arg1, %c0_i32_5 : i32
    %c0_i32_6 = arith.constant 0 : i32
    %16 = arith.cmpi eq, %arg0, %c0_i32_6 : i32
    %17 = arith.andi %15, %16 : i1
    %18 = arith.extui %17 : i1 to i32
    %c0_i32_7 = arith.constant 0 : i32
    %19 = arith.cmpi ne, %18, %c0_i32_7 : i32
    scf.if %19 {
      %c0_12 = arith.constant 0 : index
      %c0_13 = arith.constant 0 : index
      %23 = vector.load %arg2[%c0_12, %c0_13] : memref<8x16xf32, #tpu.memory_space<vmem>>, vector<8x16xf32>
      %c0_14 = arith.constant 0 : index
      %c0_15 = arith.constant 0 : index
      %24 = vector.load %arg3[%c0_14, %c0_15] : memref<8x1xi32, #tpu.memory_space<vmem>>, vector<8x1xi32>
      %cst_16 = arith.constant dense<0xFF800000> : vector<8xf32>
      %25 = vector.multi_reduction <maximumf>, %23, %cst_16 [1] : vector<8x16xf32> to vector<8xf32>
      %26 = vector.shape_cast %25 : vector<8xf32> to vector<8x1xf32>
      %27 = vector.broadcast %26 : vector<8x1xf32> to vector<8x16xf32>
      %28 = arith.subf %23, %27 : vector<8x16xf32>
      %29 = math.exp %28 : vector<8x16xf32>
      %cst_17 = arith.constant dense<0.000000e+00> : vector<8xf32>
      %30 = vector.multi_reduction <add>, %29, %cst_17 [1] : vector<8x16xf32> to vector<8xf32>
      %31 = vector.shape_cast %30 : vector<8xf32> to vector<8x1xf32>
      %32 = math.log %31 : vector<8x1xf32>
      %33 = arith.addf %26, %32 : vector<8x1xf32>
      %34 = tpu.iota {dimensions = array<i32: 1>} : vector<8x16xi32>
      %35 = vector.broadcast %24 : vector<8x1xi32> to vector<8x16xi32>
      %36 = arith.cmpi eq, %34, %35 : vector<8x16xi32>
      %cst_18 = arith.constant 0.000000e+00 : f32
      %37 = vector.broadcast %cst_18 : f32 to vector<8x16xf32>
      %38 = arith.select %36, %23, %37 : vector<8x16xi1>, vector<8x16xf32>
      %cst_19 = arith.constant dense<0.000000e+00> : vector<8xf32>
      %39 = vector.multi_reduction <add>, %38, %cst_19 [1] : vector<8x16xf32> to vector<8xf32>
      %40 = vector.shape_cast %39 : vector<8xf32> to vector<8x1xf32>
      %41 = arith.subf %33, %40 : vector<8x1xf32>
      %42 = vector.shape_cast %41 : vector<8x1xf32> to vector<1x8x1xf32>
      %cst_20 = arith.constant dense<0.000000e+00> : vector<1xf32>
      %43 = vector.multi_reduction <add>, %42, %cst_20 [1, 2] : vector<1x8x1xf32> to vector<1xf32>
      %44 = vector.shape_cast %43 : vector<1xf32> to vector<1x1x1xf32>
      %45 = vector.extract %44[0, 0, 0] : f32 from vector<1x1x1xf32>
      %46 = vector.broadcast %45 : f32 to vector<1x1xf32>
      %cst_21 = arith.constant 8.000000e+00 : f32
      %47 = vector.broadcast %cst_21 : f32 to vector<1x1xf32>
      %48 = arith.divf %46, %47 : vector<1x1xf32>
      %c0_22 = arith.constant 0 : index
      %c1 = arith.constant 1 : index
      %49 = vector.load %arg7[%c0_22, %c1] : memref<8x128xf32, #tpu.memory_space<vmem>>, vector<1x1xf32>
      tpu.vector_store %arg7[%c0_22, %c1], %48 {strides = array<i32>} : memref<8x128xf32, #tpu.memory_space<vmem>>, vector<1x1xf32>,
      %c0_23 = arith.constant 0 : index
      %c0_24 = arith.constant 0 : index
      %c0_25 = arith.constant 0 : index
      %50 = vector.load %arg6[%c0_23, %c0_24, %c0_25] : memref<8x64x64xf32, #tpu.memory_space<vmem>>, vector<8x64x64xf32>
      %cst_26 = arith.constant dense<0.000000e+00> : vector<8x64x64xf32>
      %51 = tpu.matmul %50, %50, %cst_26 {dimension_numbers = #tpu.dot_dimension_numbers<[2], [2], [1], [1], [0, 0, 0, 1, 1, 1], [0], [0]>} : vector<8x64x64xf32>, vector<8x64x64xf32>, vector<8x64x64xf32> -> vector<8x64x64xf32>
      %52 = arith.subf %51, %50 : vector<8x64x64xf32>
      %53 = arith.mulf %52, %52 : vector<8x64x64xf32>
      %cst_27 = arith.constant dense<0.000000e+00> : vector<8x64xf32>
      %54 = vector.multi_reduction <add>, %53, %cst_27 [2] : vector<8x64x64xf32> to vector<8x64xf32>
      %cst_28 = arith.constant dense<0.000000e+00> : vector<8xf32>
      %55 = vector.multi_reduction <add>, %54, %cst_28 [1] : vector<8x64xf32> to vector<8xf32>
      %56 = vector.shape_cast %55 : vector<8xf32> to vector<8x1xf32>
      %57 = math.sqrt %56 : vector<8x1xf32>
      %58 = vector.shape_cast %57 : vector<8x1xf32> to vector<1x8x1xf32>
      %cst_29 = arith.constant dense<0.000000e+00> : vector<1xf32>
      %59 = vector.multi_reduction <add>, %58, %cst_29 [1, 2] : vector<1x8x1xf32> to vector<1xf32>
      %60 = vector.shape_cast %59 : vector<1xf32> to vector<1x1x1xf32>
      %61 = vector.extract %60[0, 0, 0] : f32 from vector<1x1x1xf32>
      %62 = vector.broadcast %61 : f32 to vector<1x1xf32>
      %cst_30 = arith.constant 8.000000e+00 : f32
      %63 = vector.broadcast %cst_30 : f32 to vector<1x1xf32>
      %64 = arith.divf %62, %63 : vector<1x1xf32>
      %c0_31 = arith.constant 0 : index
      %c2 = arith.constant 2 : index
      %65 = vector.load %arg7[%c0_31, %c2] : memref<8x128xf32, #tpu.memory_space<vmem>>, vector<1x1xf32>
      tpu.vector_store %arg7[%c0_31, %c2], %64 {strides = array<i32>} : memref<8x128xf32, #tpu.memory_space<vmem>>, vector<1x1xf32>,
    } else {
    }
    %c0_8 = arith.constant 0 : index
    %c0_9 = arith.constant 0 : index
    %20 = vector.load %arg7[%c0_8, %c0_9] : memref<8x128xf32, #tpu.memory_space<vmem>>, vector<1x1xf32>
    %21 = arith.addf %20, %11 : vector<1x1xf32>
    %c0_10 = arith.constant 0 : index
    %c0_11 = arith.constant 0 : index
    %22 = vector.load %arg7[%c0_10, %c0_11] : memref<8x128xf32, #tpu.memory_space<vmem>>, vector<1x1xf32>
    tpu.vector_store %arg7[%c0_10, %c0_11], %21 {strides = array<i32>} : memref<8x128xf32, #tpu.memory_space<vmem>>, vector<1x1xf32>,
    return
  }
  func.func @transform_0(%arg0: i32, %arg1: i32) -> (i32, i32) {
    %c0_i32 = arith.constant 0 : i32
    %c0_i32_0 = arith.constant 0 : i32
    %c0_i32_1 = arith.constant 0 : i32
    return %c0_i32, %c0_i32_0 : i32, i32
  }
  func.func @transform_1(%arg0: i32, %arg1: i32) -> (i32, i32) {
    %c0_i32 = arith.constant 0 : i32
    %c0_i32_0 = arith.constant 0 : i32
    %c0_i32_1 = arith.constant 0 : i32
    return %c0_i32, %c0_i32_0 : i32, i32
  }
  func.func @transform_2(%arg0: i32, %arg1: i32) -> (i32, i32) {
    %c1_i32 = arith.constant 1 : i32
    %0 = arith.muli %arg0, %c1_i32 : i32
    %1 = arith.addi %0, %arg1 : i32
    %c0_i32 = arith.constant 0 : i32
    %c0_i32_0 = arith.constant 0 : i32
    return %c0_i32, %1 : i32, i32
  }
  func.func @transform_3(%arg0: i32, %arg1: i32) -> (i32, i32) {
    %c1_i32 = arith.constant 1 : i32
    %0 = arith.muli %arg0, %c1_i32 : i32
    %1 = arith.addi %0, %arg1 : i32
    %c0_i32 = arith.constant 0 : i32
    %c0_i32_0 = arith.constant 0 : i32
    return %c0_i32, %1 : i32, i32
  }
  func.func @transform_4(%arg0: i32, %arg1: i32) -> (i32, i32, i32) {
    %c0_i32 = arith.constant 0 : i32
    %c0_i32_0 = arith.constant 0 : i32
    %c0_i32_1 = arith.constant 0 : i32
    %c0_i32_2 = arith.constant 0 : i32
    return %c0_i32, %c0_i32_0, %c0_i32_1 : i32, i32, i32
  }
  func.func @transform_5(%arg0: i32, %arg1: i32) -> (i32, i32) {
    %c0_i32 = arith.constant 0 : i32
    %c0_i32_0 = arith.constant 0 : i32
    return %arg0, %c0_i32 : i32, i32
  }
}

</mosaic_0001>

<bundles_post_ra>
// kernel: pointnet_loss.1
= control target key start
LH: loop header
LB: loop body
LE: loop exit
PB: predicated region body
PF: predicated region fallthrough
CT: control target
= control target key end

     0   :  { %10 = vsyncpa [#allocation3], 0  ;;  %s3111_s18 = smov 0   ;;  %s3113_s19 = smov 0   ;;  %s3974_s0 = inlined_call_operand.vmem [shape: f32[8,16], index: 0, kind: input, shape index: {}]   ;;  %s3975_s1 = inlined_call_operand.vmem [shape: s32[8,1], index: 1, kind: input, shape index: {}]   ;;  %s3976_s2 = inlined_call_operand.vmem [shape: f32[8,256], index: 2, kind: input, shape index: {}]   ;;  %s3977_s3 = inlined_call_operand.vmem [shape: s32[1,256], index: 3, kind: input, shape index: {}]   ;;  %s3978_s4 = inlined_call_operand.hbm [shape: f32[8,64,64], index: 4, kind: input, shape index: {}]   ;;  %s3979_s5 = inlined_call_operand.vmem [shape: f32[16,128], index: 5, kind: output, shape index: {}]  }
   0x1   :  { %s3115_s20 = smov 0  }
   0x2 LB: > { %s2280_s21 = sadd.s32 4294967295, %s3074_s20   ;;  %s28_s22 = sadd.s32 1, %s3070_s19  ;;  %s3074_s20 = sphi %s3115_s20, %s16_s20   ;;  %s3070_s19 = sphi %s3113_s19, %s4049_s19   ;;  %s3066_s18 = sphi %s3111_s18, %s4048_s18  }
   0x3   : > { %p30_p0 = scmp.ge.s32.totalorder %s28_s22, 2  ;;  %p2282_p1 = scmp.ge.s32.totalorder %s3074_s20, 1 }
   0x4   : > { %p178_p2 = scmp.lt.s32.totalorder %s3074_s20, 3  ;;  %p3136_p4 = scmp.eq.s32.totalorder %s2280_s21, 0 }
   0x5   : > { %s4051_s22 = smov (%p30_p0, %s28_s22), 0  ;;  %s3076_s25 = smov [#allocation2]  }
   0x6   : > { %p3132_p3 = pnand %p2282_p1, %p178_p2  ;;  %s196_s26 = sshll.u32 %s3076_s25, 4  ;;  %s197_s26 = int_to_ptr.vmem [resolvable:$true] %s196_s26 }
   0x7   : > { %s4004_s24 = scalar_select %p3136_p4, 1, 0 }
   0x8   : > { %s4003_s23 = scalar_select %p3132_p3, 1, 0 }
   0x9   : > { %p2976_p5 = pneg %p3132_p3  ;;  %s3020_s30 = scalar_lea.hbm %s3978_s4, 8192 }
   0xa   : > { %p3021_p7 = scmp.ne.s32.totalorder %s3978_s4, %s3020_s30  ;;  %p3027_p11 = scmp.lt.u32.totalorder %s3020_s30, %s3978_s4 }
   0xb   : > { %p3144_p6 = pnand %p3136_p4, %p2976_p5 }
   0xd   : > { %p3022_p8 = pneg %p3144_p6 }
   0xf   : > { %p3023_p9 = pnand %p3022_p8, %p3021_p7 }
  0x11   : > { %p3024_p10 = pneg %p3023_p9 }
  0x13   : > { %p3029_p12 = pnand %p3027_p11, %p3024_p10 }
  0x15   : > { %3032 = shalt.err (!%p3029_p12)
}
  0x16   : > { %s3033_s10 = scalar_lea.vmem %s197_s26, 8192  ;;  %p3041_p2 = scmp.lt.s32.totalorder %s197_s26, %s197_s26 }
  0x17   : > { %p3034_p13 = scmp.ne.s32.totalorder %s197_s26, %s3033_s10  ;;  %p3042_p5 = scmp.lt.s32.totalorder %s3033_s10, %s3033_s10 }
  0x19   : > { %p3036_p0 = pnand %p3034_p13, %p3022_p8  ;;  %p3043_p4 = por %p3042_p5, %p3041_p2 }
  0x1b   : > { %p3037_p1 = pneg %p3036_p0 }
  0x1d   : > { %p3044_p3 = pnand %p3043_p4, %p3037_p1 }
  0x1f   : > { %3047 = shalt.err (!%p3044_p3)
}
  0x20   : > { %s3077_s11 = smov 128   ;;  %s3078_s12 = smov 8  }
  0x21   : > { %2979 = dma.hbm_to_vmem [thread:$0]  (!%p3144_p6), %s3978_s4, 8192, %s197_s26, [#allocation3], %s3077_s11, %s3077_s11, %s3078_s12  }
  0x22   : > { %p4006_p7 = scmp.ne.s32.totalorder %s4003_s23, 0 }
  0x24   : > { %229 = sbr.rel (%p4006_p7) target bundleno = 1159 (0x487), region = 40 }
  0x2b   : > { %p4007_p9 = scmp.ne.s32.totalorder %s4004_s24, 0 }
  0x2d   : > { %3061 = dma.done.wait (%p4007_p9), [#allocation3], 8192  }
  0x2e   : > { %3063 = vsyncadd (%p4007_p9), [#allocation3], 4294959104  ;;  %p261_p3 = scmp.lt.s32.totalorder %s3066_s18, 1  ;;  %v3983_v0 = vlaneseq  ;;  %v3079_v2 = vmov 0.0   ;;  %p300_p4 = scmp.eq.s32.totalorder %s3066_s18, 0 }
  0x30   : > { %s262_s15 = scalar_select %p261_p3, %s3066_s18, 1  ;;  %v3176_v1 = vshrl.u32 %v3983_v0, 7 }
  0x32   : > { %s2287_s16 = sshll.u32 %s262_s15, 3  ;;  %s269_s25 = scalar_lea.vmem %s3977_s3, %s262_s15  ;;  %4008 = vst [vmem:[#allocation5_spill] sm:$0xff] %v3176_v1 }
  0x33   : > { %s3181_s27 = scalar_lea.vmem %s3979_s5, %s2287_s16  ;;  %s264_s29 = scalar_lea.vmem %s3976_s2, %s2287_s16  ;;  %v2289_v4 = vld [vmem:[%s269_s25] ss:$0 sm:$0xff] }
  0x34   : > { %299 = vst [vmem:[%s3181_s27] sm:$0xff] %v3079_v2  ;;  %v275_v3 = vld [vmem:[%s264_s29] sm:$0xff]  ;;  %vm283_vm0 = vcmp.eq.s32.totalorder %v3176_v1, %v2289_v4 }
  0x35   : > { %v284_v5 = vsel %vm283_vm0, %v275_v3, 0.0 }
  0x36   : > { %285 = vadd.xlane.f32.xlu0 %v284_v5 }
  0xc3   : > { %v286_v6 = vpop.xlane.xlu0 %285 }
  0xc4   : > { %v287_v7 = vrot.slane %v286_v6, 4 }
  0xc6   : > { %v288_v8 = vadd.f32 %v287_v7, %v286_v6 }
  0xc8   : > { %v289_v9 = vrot.slane %v288_v8, 2 }
  0xca   : > { %v290_v10 = vadd.f32 %v289_v9, %v288_v8 }
  0xcc   : > { %v291_v11 = vrot.slane %v290_v10, 1 }
  0xce   : > { %v292_v12 = vadd.f32 %v291_v11, %v290_v10 }
  0xd0   : > { %2966 = vpush %v292_v12 }
  0xfb   : > { %304 = sbr.rel (!%p300_p4) target bundleno = 1149 (0x47d), region = 52 }
 0x101   : > { %s3189_s30 = spop %2966 }
 0x102   : > { %v3192_v14 = vld [vmem:[#allocation2] sm:$0xff]  ;;  %v3194_v15 = vld [vmem:[#allocation2 + $0x8] sm:$0xff]  ;;  %vm411_vm1 = vcmask 523264   ;;  %v3208_v20 = vld [vmem:[#allocation2 + $0x10] sm:$0xff]  ;;  %vm307_vm3 = vcmask 130048   ;;  %vm1837_vm4 = vcmask 130112  }
 0x103   : > { %v3196_v16 = vld [vmem:[#allocation2 + $0x40] sm:$0xff]  ;;  %v2774_v17 = vpack.c.bf16 %v3194_v15, %v3192_v14  ;;  %vm3202_vm2 = vmpackc.low %vm411_vm1, %vm411_vm1  ;;  %v3206_v19 = vld [vmem:[#allocation2 + $0x48] sm:$0xff]  ;;  %2566 = vmatprep.mubr.msk.f32.mxu0 %vm411_vm1, %v3192_v14  ;;  %vm1844_vm5 = vcmask 195712   ;;  %vm1851_vm6 = vcmask 261312   ;;  %vm1858_vm7 = vcmask 326912  }
 0x104   : > { %2594 = vmatprep.mubr.msk.f32.mxu1 %vm411_vm1, %v3196_v16  ;;  %v2798_v21 = vpack.c.bf16 %v3206_v19, %v3196_v16  ;;  %v3216_v22 = vld [vmem:[#allocation2 + $0x18] sm:$0xff]  ;;  %v3218_v23 = vld [vmem:[#allocation2 + $0x50] sm:$0xff]  ;;  %v3238_v27 = vld [vmem:[#allocation2 + $0x20] sm:$0xff]  ;;  %vm1865_vm8 = vcmask 392512   ;;  %vm1872_vm9 = vcmask 458112   ;;  %vm1879_vm10 = vcmask 523712  }
 0x105   : > { %v3220_v24 = vld [vmem:[#allocation2 + $0x58] sm:$0xff]  ;;  %2776 = vmatprep.subr.msk.bf16.mxu0 %vm3202_vm2, %v2774_v17  ;;  %v2780_v25 = vpack.c.bf16 %v3216_v22, %v3208_v20  ;;  %v3240_v28 = vld [vmem:[#allocation2 + $0x28] sm:$0xff]  ;;  %v3242_v29 = vld [vmem:[#allocation2 + $0x60] sm:$0xff]  ;;  %vm2154_vm11 = vcmask 1041409   ;;  %vm2156_vm12 = vcmask 1042434   ;;  %vm2158_vm13 = vcmask 1043459  }
 0x106   : > { %v2804_v26 = vpack.c.bf16 %v3220_v24, %v3218_v23  ;;  %2800 = vmatprep.subr.msk.bf16.mxu1 %vm3202_vm2, %v2798_v21  ;;  %2779 = vmatpush3.bf16.xpose.msk.msra.mxu0 %vm3202_vm2, %v2774_v17  ;;  %v3244_v30 = vld [vmem:[#allocation2 + $0x68] sm:$0xff]  ;;  %v2786_v31 = vpack.c.bf16 %v3240_v28, %v3238_v27  ;;  %v3258_v33 = vld [vmem:[#allocation2 + $0x30] sm:$0xff]  ;;  %v3260_v34 = vld [vmem:[#allocation2 + $0x38] sm:$0xff]  ;;  %vm2160_vm14 = vcmask 1044484   ;;  %vm2162_vm15 = vcmask 1045509  }
 0x107   : > { %2803 = vmatpush3.bf16.xpose.msk.msra.mxu1 %vm3202_vm2, %v2798_v21  ;;  %2782 = vmatprep.subr.msk.bf16.mxu0 %vm3202_vm2, %v2780_v25  ;;  %v2810_v32 = vpack.c.bf16 %v3244_v30, %v3242_v29  ;;  %v3262_v35 = vld [vmem:[#allocation2 + $0x70] sm:$0xff]  ;;  %v3264_v36 = vld [vmem:[#allocation2 + $0x78] sm:$0xff]  ;;  %v2792_v37 = vpack.c.bf16 %v3260_v34, %v3258_v33  ;;  %v3279_v39 = vld [vmem:[%s3974_s0] sm:$0xff]  ;;  %vm2164_vm0 = vcmask 1046534  }
 0x108   : > { %2806 = vmatprep.subr.msk.bf16.mxu1 %vm3202_vm2, %v2804_v26  ;;  %v2816_v38 = vpack.c.bf16 %v3264_v36, %v3262_v35  ;;  %4011 = vst [vmem:[#allocation6_spill] sm:$0xff] %v3279_v39  ;;  %v3283_v40 = vld [vmem:[#allocation2 + $0x80] sm:$0xff]  ;;  %v3285_v41 = vld [vmem:[#allocation2 + $0x88] sm:$0xff]  ;;  %v308_v42 = vsel %vm307_vm3, %v3279_v39, -inf  ;;  %v3305_v47 = vld [vmem:[#allocation2 + $0x90] sm:$0xff] }
 0x109   : > { %v3289_v43 = vld [vmem:[#allocation2 + $0xc0] sm:$0xff]  ;;  %v3291_v44 = vld [vmem:[#allocation2 + $0xc8] sm:$0xff]  ;;  %309 = vmax.xlane.f32.xlu0 %v308_v42  ;;  %v2822_v45 = vpack.c.bf16 %v3285_v41, %v3283_v40  ;;  %v3307_v48 = vld [vmem:[#allocation2 + $0x98] sm:$0xff] }
 0x10a   : > { %v2846_v46 = vpack.c.bf16 %v3291_v44, %v3289_v43  ;;  %v3309_v49 = vld [vmem:[#allocation2 + $0xd0] sm:$0xff]  ;;  %v3311_v50 = vld [vmem:[#allocation2 + $0xd8] sm:$0xff]  ;;  %v2828_v51 = vpack.c.bf16 %v3307_v48, %v3305_v47  ;;  %v3331_v53 = vld [vmem:[#allocation2 + $0xa0] sm:$0xff] }
 0x10b   : > { %v2852_v52 = vpack.c.bf16 %v3311_v50, %v3309_v49  ;;  %v3333_v54 = vld [vmem:[#allocation2 + $0xa8] sm:$0xff]  ;;  %v3339_v55 = vld [vmem:[#allocation2 + $0xe0] sm:$0xff]  ;;  %v3367_v59 = vld [vmem:[#allocation2 + $0xb0] sm:$0xff] }
 0x10c   : > { %v3341_v56 = vld [vmem:[#allocation2 + $0xe8] sm:$0xff]  ;;  %v2834_v57 = vpack.c.bf16 %v3333_v54, %v3331_v53  ;;  %v3369_v60 = vld [vmem:[#allocation2 + $0xb8] sm:$0xff]  ;;  %v3375_v61 = vld [vmem:[#allocation2 + $0xf0] sm:$0xff] }
 0x10d   : > { %v2858_v58 = vpack.c.bf16 %v3341_v56, %v3339_v55  ;;  %v3377_v62 = vld [vmem:[#allocation2 + $0xf8] sm:$0xff]  ;;  %v2840_v63 = vpack.c.bf16 %v3369_v60, %v3367_v59  ;;  %v3397_v3 = vld [vmem:[#allocation2 + $0x100] sm:$0xff]  ;;  %v3399_v4 = vld [vmem:[#allocation2 + $0x108] sm:$0xff] }
 0x10e   : > { %2785 = vmatpush3.bf16.xpose.msk.msra.mxu0 %vm3202_vm2, %v2780_v25  ;;  %v2864_v2 = vpack.c.bf16 %v3377_v62, %v3375_v61  ;;  %v3401_v5 = vld [vmem:[#allocation2 + $0x140] sm:$0xff]  ;;  %v3403_v6 = vld [vmem:[#allocation2 + $0x148] sm:$0xff]  ;;  %v2870_v7 = vpack.c.bf16 %v3399_v4, %v3397_v3  ;;  %v3417_v9 = vld [vmem:[#allocation2 + $0x110] sm:$0xff] }
 0x10f   : > { %2809 = vmatpush3.bf16.xpose.msk.msra.mxu1 %vm3202_vm2, %v2804_v26  ;;  %2788 = vmatprep.subr.msk.bf16.mxu0 %vm3202_vm2, %v2786_v31  ;;  %v2894_v8 = vpack.c.bf16 %v3403_v6, %v3401_v5  ;;  %v3419_v10 = vld [vmem:[#allocation2 + $0x118] sm:$0xff]  ;;  %v3421_v11 = vld [vmem:[#allocation2 + $0x150] sm:$0xff]  ;;  %v3443_v25 = vld [vmem:[#allocation2 + $0x120] sm:$0xff] }
 0x110   : > { %2812 = vmatprep.subr.msk.bf16.mxu1 %vm3202_vm2, %v2810_v32  ;;  %4012 = vst [vmem:[#allocation7_spill] sm:$0xff] %v3421_v11  ;;  %v3423_v12 = vld [vmem:[#allocation2 + $0x158] sm:$0xff]  ;;  %v2876_v17 = vpack.c.bf16 %v3419_v10, %v3417_v9  ;;  %v3445_v26 = vld [vmem:[#allocation2 + $0x128] sm:$0xff]  ;;  %v3479_v42 = vld [vmem:[#allocation2 + $0x130] sm:$0xff] }
 0x111   : > { %v2900_v21 = vpack.c.bf16 %v3423_v12, %v3421_v11  ;;  %4013 = vst [vmem:[#allocation8_spill] sm:$0xff] %v3445_v26  ;;  %4016 = vst [vmem:[#allocation11_spill] sm:$0xff] %v3479_v42  ;;  %v3535_v13 = vld [vmem:[#allocation2 + $0x1d8] sm:$0xff]  ;;  %v3555_v0 = vld [vmem:[#allocation2 + $0x1a0] sm:$0xff] }
 0x112   : > { %4019 = vst [vmem:[#allocation14_spill] sm:$0xff] %v3535_v13  ;;  %4020 = vst [vmem:[#allocation15_spill] sm:$0xff] %v3555_v0  ;;  %v3557_v1 = vld [vmem:[#allocation2 + $0x1a8] sm:$0xff] }
 0x113   : > { %4021 = vst [vmem:[#allocation16_spill] sm:$0xff] %v3557_v1  ;;  %v2930_v39 = vpack.c.bf16 %v3557_v1, %v3555_v0 }
 0x116   : > { %2791 = vmatpush3.bf16.xpose.msk.msra.mxu0 %vm3202_vm2, %v2786_v31  ;;  %v3451_v31 = vld [vmem:[#allocation2 + $0x160] sm:$0xff] }
 0x117   : > { %2815 = vmatpush3.bf16.xpose.msk.msra.mxu1 %vm3202_vm2, %v2810_v32  ;;  %2794 = vmatprep.subr.msk.bf16.mxu0 %vm3202_vm2, %v2792_v37  ;;  %4014 = vst [vmem:[#allocation9_spill] sm:$0xff] %v3451_v31  ;;  %v3453_v32 = vld [vmem:[#allocation2 + $0x168] sm:$0xff] }
 0x118   : > { %2818 = vmatprep.subr.msk.bf16.mxu1 %vm3202_vm2, %v2816_v38  ;;  %4015 = vst [vmem:[#allocation10_spill] sm:$0xff] %v3453_v32 }
 0x11e   : > { %2797 = vmatpush3.bf16.xpose.msk.msra.mxu0 %vm3202_vm2, %v2792_v37  ;;  %v2882_v37 = vpack.c.bf16 %v3445_v26, %v3443_v25 }
 0x11f   : > { %2821 = vmatpush3.bf16.xpose.msk.msra.mxu1 %vm3202_vm2, %v2816_v38  ;;  %2824 = vmatprep.subr.msk.bf16.mxu0 %vm3202_vm2, %v2822_v45  ;;  %v2906_v38 = vpack.c.bf16 %v3453_v32, %v3451_v31 }
 0x120   : > { %2848 = vmatprep.subr.msk.bf16.mxu1 %vm3202_vm2, %v2846_v46 }
 0x125   : > { %2567 = vmatmul.mubr.msk.f32.vlgmr.msra.gmra.mrb[0].mxu0 %vm411_vm1, %v3194_v15 }
 0x126   : > { %2595 = vmatmul.mubr.msk.f32.vlgmr.msra.gmra.mrb[0].mxu1 %vm411_vm1, %v3206_v19  ;;  %2827 = vmatpush3.bf16.xpose.msk.msra.mxu0 %vm3202_vm2, %v2822_v45  ;;  %v3481_v45 = vld [vmem:[#allocation2 + $0x138] sm:$0xff] }
 0x127   : > { %2851 = vmatpush3.bf16.xpose.msk.msra.mxu1 %vm3202_vm2, %v2846_v46  ;;  %2569 = vmatprep.mubr.msk.f32.mxu0 %vm411_vm1, %v3208_v20  ;;  %v3485_v46 = vld [vmem:[#allocation2 + $0x170] sm:$0xff] }
 0x128   : > { %2597 = vmatprep.mubr.msk.f32.mxu1 %vm411_vm1, %v3218_v23  ;;  %2830 = vmatprep.subr.msk.bf16.mxu0 %vm3202_vm2, %v2828_v51 }
 0x129   : > { %2570 = vmatmul.mubr.msk.f32.gmra.mrb[2].mxu0 %vm411_vm1, %v3216_v22  ;;  %2854 = vmatprep.subr.msk.bf16.mxu1 %vm3202_vm2, %v2852_v52 }
 0x12a   : > { %2598 = vmatmul.mubr.msk.f32.gmra.mrb[2].mxu1 %vm411_vm1, %v3220_v24  ;;  %2572 = vmatprep.mubr.msk.f32.mxu0 %vm411_vm1, %v3238_v27 }
 0x12b   : > { %2600 = vmatprep.mubr.msk.f32.mxu1 %vm411_vm1, %v3242_v29 }
 0x12d   : > { %2573 = vmatmul.mubr.msk.f32.gmra.mrb[4].mxu0 %vm411_vm1, %v3240_v28 }
 0x12e   : > { %2833 = vmatpush3.bf16.xpose.msk.msra.mxu0 %vm3202_vm2, %v2828_v51  ;;  %2601 = vmatmul.mubr.msk.f32.gmra.mrb[4].mxu1 %vm411_vm1, %v3244_v30  ;;  %v3487_v51 = vld [vmem:[#allocation2 + $0x178] sm:$0xff] }
 0x12f   : > { %2857 = vmatpush3.bf16.xpose.msk.msra.mxu1 %vm3202_vm2, %v2852_v52  ;;  %2836 = vmatprep.subr.msk.bf16.mxu0 %vm3202_vm2, %v2834_v57  ;;  %v2888_v52 = vpack.c.bf16 %v3481_v45, %v3479_v42 }
 0x130   : > { %2860 = vmatprep.subr.msk.bf16.mxu1 %vm3202_vm2, %v2858_v58  ;;  %2575 = vmatprep.mubr.msk.f32.mxu0 %vm411_vm1, %v3258_v33 }
 0x131   : > { %2576 = vmatmul.mubr.msk.f32.gmra.mrb[6].mxu0 %vm411_vm1, %v3260_v34  ;;  %2603 = vmatprep.mubr.msk.f32.mxu1 %vm411_vm1, %v3262_v35 }
 0x132   : > { %2604 = vmatmul.mubr.msk.f32.gmra.mrb[6].mxu1 %vm411_vm1, %v3264_v36  ;;  %2622 = vmatprep.mubr.msk.f32.mxu0 %vm411_vm1, %v3283_v40 }
 0x133   : > { %2650 = vmatprep.mubr.msk.f32.mxu1 %vm411_vm1, %v3289_v43 }
 0x136   : > { %2839 = vmatpush3.bf16.xpose.msk.msra.mxu0 %vm3202_vm2, %v2834_v57  ;;  %v2912_v57 = vpack.c.bf16 %v3487_v51, %v3485_v46 }
 0x137   : > { %2863 = vmatpush3.bf16.xpose.msk.msra.mxu1 %vm3202_vm2, %v2858_v58  ;;  %2842 = vmatprep.subr.msk.bf16.mxu0 %vm3202_vm2, %v2840_v63  ;;  %v3509_v58 = vld [vmem:[#allocation2 + $0x180] sm:$0xff] }
 0x138   : > { %2866 = vmatprep.subr.msk.bf16.mxu1 %vm3202_vm2, %v2864_v2 }
 0x13e   : > { %2845 = vmatpush3.bf16.xpose.msk.msra.mxu0 %vm3202_vm2, %v2840_v63  ;;  %v3511_v63 = vld [vmem:[#allocation2 + $0x188] sm:$0xff] }
 0x13f   : > { %2869 = vmatpush3.bf16.xpose.msk.msra.mxu1 %vm3202_vm2, %v2864_v2  ;;  %2872 = vmatprep.subr.msk.bf16.mxu0 %vm3202_vm2, %v2870_v7  ;;  %v3513_v2 = vld [vmem:[#allocation2 + $0x1c0] sm:$0xff] }
 0x140   : > { %2896 = vmatprep.subr.msk.bf16.mxu1 %vm3202_vm2, %v2894_v8 }
 0x145   : > { %2623 = vmatmul.mubr.msk.f32.vlgmr.msra.gmra.mrb[8].mxu0 %vm411_vm1, %v3285_v41 }
 0x146   : > { %2651 = vmatmul.mubr.msk.f32.vlgmr.msra.gmra.mrb[8].mxu1 %vm411_vm1, %v3291_v44  ;;  %2875 = vmatpush3.bf16.xpose.msk.msra.mxu0 %vm3202_vm2, %v2870_v7  ;;  %v3515_v7 = vld [vmem:[#allocation2 + $0x1c8] sm:$0xff] }
 0x147   : > { %2899 = vmatpush3.bf16.xpose.msk.msra.mxu1 %vm3202_vm2, %v2894_v8  ;;  %2653 = vmatprep.mubr.msk.f32.mxu1 %vm411_vm1, %v3309_v49  ;;  %v2918_v8 = vpack.c.bf16 %v3511_v63, %v3509_v58 }
 0x148   : > { %2625 = vmatprep.mubr.msk.f32.mxu0 %vm411_vm1, %v3305_v47  ;;  %2878 = vmatprep.subr.msk.bf16.mxu0 %vm3202_vm2, %v2876_v17 }
 0x149   : > { %2626 = vmatmul.mubr.msk.f32.gmra.mrb[10].mxu0 %vm411_vm1, %v3307_v48  ;;  %2902 = vmatprep.subr.msk.bf16.mxu1 %vm3202_vm2, %v2900_v21 }
 0x14a   : > { %2654 = vmatmul.mubr.msk.f32.gmra.mrb[10].mxu1 %vm411_vm1, %v3311_v50  ;;  %2628 = vmatprep.mubr.msk.f32.mxu0 %vm411_vm1, %v3331_v53 }
 0x14b   : > { %2656 = vmatprep.mubr.msk.f32.mxu1 %vm411_vm1, %v3339_v55 }
 0x14d   : > { %2629 = vmatmul.mubr.msk.f32.gmra.mrb[12].mxu0 %vm411_vm1, %v3333_v54 }
 0x14e   : > { %2881 = vmatpush3.bf16.xpose.msk.msra.mxu0 %vm3202_vm2, %v2876_v17  ;;  %2657 = vmatmul.mubr.msk.f32.gmra.mrb[12].mxu1 %vm411_vm1, %v3341_v56  ;;  %v2942_v17 = vpack.c.bf16 %v3515_v7, %v3513_v2 }
 0x14f   : > { %2905 = vmatpush3.bf16.xpose.msk.msra.mxu1 %vm3202_vm2, %v2900_v21  ;;  %2884 = vmatprep.subr.msk.bf16.mxu0 %vm3202_vm2, %v2882_v37  ;;  %v3529_v21 = vld [vmem:[#allocation2 + $0x190] sm:$0xff] }
 0x150   : > { %2908 = vmatprep.subr.msk.bf16.mxu1 %vm3202_vm2, %v2906_v38  ;;  %2631 = vmatprep.mubr.msk.f32.mxu0 %vm411_vm1, %v3367_v59  ;;  %4017 = vst [vmem:[#allocation12_spill] sm:$0xff] %v3529_v21 }
 0x151   : > { %2632 = vmatmul.mubr.msk.f32.gmra.mrb[14].mxu0 %vm411_vm1, %v3369_v60  ;;  %2659 = vmatprep.mubr.msk.f32.mxu1 %vm411_vm1, %v3375_v61 }
 0x152   : > { %2660 = vmatmul.mubr.msk.f32.gmra.mrb[14].mxu1 %vm411_vm1, %v3377_v62  ;;  %2678 = vmatprep.mubr.msk.f32.mxu0 %vm411_vm1, %v3397_v3 }
 0x153   : > { %2706 = vmatprep.mubr.msk.f32.mxu1 %vm411_vm1, %v3401_v5 }
 0x156   : > { %2887 = vmatpush3.bf16.xpose.msk.msra.mxu0 %vm3202_vm2, %v2882_v37  ;;  %v3531_v37 = vld [vmem:[#allocation2 + $0x198] sm:$0xff] }
 0x157   : > { %2911 = vmatpush3.bf16.xpose.msk.msra.mxu1 %vm3202_vm2, %v2906_v38  ;;  %2890 = vmatprep.subr.msk.bf16.mxu0 %vm3202_vm2, %v2888_v52  ;;  %v3533_v38 = vld [vmem:[#allocation2 + $0x1d0] sm:$0xff] }
 0x158   : > { %2914 = vmatprep.subr.msk.bf16.mxu1 %vm3202_vm2, %v2912_v57  ;;  %4018 = vst [vmem:[#allocation13_spill] sm:$0xff] %v3533_v38 }
 0x15e   : > { %2893 = vmatpush3.bf16.xpose.msk.msra.mxu0 %vm3202_vm2, %v2888_v52  ;;  %v2924_v52 = vpack.c.bf16 %v3531_v37, %v3529_v21 }
 0x15f   : > { %2917 = vmatpush3.bf16.xpose.msk.msra.mxu1 %vm3202_vm2, %v2912_v57  ;;  %2920 = vmatprep.subr.msk.bf16.mxu0 %vm3202_vm2, %v2918_v8  ;;  %v2948_v57 = vpack.c.bf16 %v3535_v13, %v3533_v38 }
 0x160   : > { %2944 = vmatprep.subr.msk.bf16.mxu1 %vm3202_vm2, %v2942_v17 }
 0x165   : > { %2679 = vmatmul.mubr.msk.f32.vlgmr.msra.gmra.mrb[16].mxu0 %vm411_vm1, %v3399_v4 }
 0x166   : > { %2707 = vmatmul.mubr.msk.f32.vlgmr.msra.gmra.mrb[16].mxu1 %vm411_vm1, %v3403_v6  ;;  %2923 = vmatpush3.bf16.xpose.msk.msra.mxu0 %vm3202_vm2, %v2918_v8  ;;  %v3563_v8 = vld [vmem:[#allocation2 + $0x1e0] sm:$0xff] }
 0x167   : > { %2947 = vmatpush3.bf16.xpose.msk.msra.mxu1 %vm3202_vm2, %v2942_v17  ;;  %2681 = vmatprep.mubr.msk.f32.mxu0 %vm411_vm1, %v3417_v9  ;;  %4022 = vst [vmem:[#allocation17_spill] sm:$0xff] %v3563_v8  ;;  %v3565_v17 = vld [vmem:[#allocation2 + $0x1e8] sm:$0xff] }
 0x168   : > { %2709 = vmatprep.mubr.msk.f32.mxu1 %vm411_vm1, %v3421_v11  ;;  %2926 = vmatprep.subr.msk.bf16.mxu0 %vm3202_vm2, %v2924_v52  ;;  %4023 = vst [vmem:[#allocation18_spill] sm:$0xff] %v3565_v17  ;;  %v2954_v11 = vpack.c.bf16 %v3565_v17, %v3563_v8 }
 0x169   : > { %2682 = vmatmul.mubr.msk.f32.gmra.mrb[18].mxu0 %vm411_vm1, %v3419_v10  ;;  %2950 = vmatprep.subr.msk.bf16.mxu1 %vm3202_vm2, %v2948_v57 }
 0x16a   : > { %2710 = vmatmul.mubr.msk.f32.gmra.mrb[18].mxu1 %vm411_vm1, %v3423_v12  ;;  %2684 = vmatprep.mubr.msk.f32.mxu0 %vm411_vm1, %v3443_v25 }
 0x16b   : > { %2712 = vmatprep.mubr.msk.f32.mxu1 %vm411_vm1, %v3451_v31  ;;  %v3591_v31 = vld [vmem:[#allocation2 + $0x1b0] sm:$0xff] }
 0x16c   : > { %4024 = vst [vmem:[#allocation19_spill] sm:$0xff] %v3591_v31 }
 0x16d   : > { %2685 = vmatmul.mubr.msk.f32.gmra.mrb[20].mxu0 %vm411_vm1, %v3445_v26  ;;  %v3593_v26 = vld [vmem:[#allocation2 + $0x1b8] sm:$0xff] }
 0x16e   : > { %2929 = vmatpush3.bf16.xpose.msk.msra.mxu0 %vm3202_vm2, %v2924_v52  ;;  %2713 = vmatmul.mubr.msk.f32.gmra.mrb[20].mxu1 %vm411_vm1, %v3453_v32  ;;  %4025 = vst [vmem:[#allocation20_spill] sm:$0xff] %v3593_v26  ;;  %v3599_v52 = vld [vmem:[#allocation2 + $0x1f0] sm:$0xff] }
 0x16f   : > { %2953 = vmatpush3.bf16.xpose.msk.msra.mxu1 %vm3202_vm2, %v2948_v57  ;;  %2932 = vmatprep.subr.msk.bf16.mxu0 %vm3202_vm2, %v2930_v39  ;;  %4026 = vst [vmem:[#allocation21_spill] sm:$0xff] %v3599_v52  ;;  %v3601_v57 = vld [vmem:[#allocation2 + $0x1f8] sm:$0xff] }
 0x170   : > { %2956 = vmatprep.subr.msk.bf16.mxu1 %vm3202_vm2, %v2954_v11  ;;  %2687 = vmatprep.mubr.msk.f32.mxu0 %vm411_vm1, %v3479_v42  ;;  %4027 = vst [vmem:[#allocation22_spill] sm:$0xff] %v3601_v57  ;;  %v2936_v42 = vpack.c.bf16 %v3593_v26, %v3591_v31  ;;  %v2960_v32 = vpack.c.bf16 %v3601_v57, %v3599_v52 }
 0x171   : > { %2688 = vmatmul.mubr.msk.f32.gmra.mrb[22].mxu0 %vm411_vm1, %v3481_v45  ;;  %2715 = vmatprep.mubr.msk.f32.mxu1 %vm411_vm1, %v3485_v46 }
 0x172   : > { %2716 = vmatmul.mubr.msk.f32.gmra.mrb[22].mxu1 %vm411_vm1, %v3487_v51  ;;  %2734 = vmatprep.mubr.msk.f32.mxu0 %vm411_vm1, %v3509_v58 }
 0x173   : > { %2762 = vmatprep.mubr.msk.f32.mxu1 %vm411_vm1, %v3513_v2 }
 0x176   : > { %2935 = vmatpush3.bf16.xpose.msk.msra.mxu0 %vm3202_vm2, %v2930_v39 }
 0x177   : > { %2959 = vmatpush3.bf16.xpose.msk.msra.mxu1 %vm3202_vm2, %v2954_v11  ;;  %2938 = vmatprep.subr.msk.bf16.mxu0 %vm3202_vm2, %v2936_v42 }
 0x178   : > { %2962 = vmatprep.subr.msk.bf16.mxu1 %vm3202_vm2, %v2960_v32 }
 0x17e   : > { %2941 = vmatpush3.bf16.xpose.msk.msra.mxu0 %vm3202_vm2, %v2936_v42 }
 0x17f   : > { %2965 = vmatpush3.bf16.xpose.msk.msra.mxu1 %vm3202_vm2, %v2960_v32  ;;  %vm2166_vm2 = vcmask 1047559  }
 0x185   : > { %2735 = vmatmul.mubr.msk.f32.vlgmr.msra.gmra.mrb[24].mxu0 %vm411_vm1, %v3511_v63 }
 0x186   : > { %2763 = vmatmul.mubr.msk.f32.vlgmr.msra.gmra.mrb[24].mxu1 %vm411_vm1, %v3515_v7  ;;  %2737 = vmatprep.mubr.msk.f32.mxu0 %vm411_vm1, %v3529_v21 }
 0x187   : > { %2765 = vmatprep.mubr.msk.f32.mxu1 %vm411_vm1, %v3533_v38 }
 0x189   : > { %2738 = vmatmul.mubr.msk.f32.gmra.mrb[26].mxu0 %vm411_vm1, %v3531_v37 }
 0x18a   : > { %2766 = vmatmul.mubr.msk.f32.gmra.mrb[26].mxu1 %vm411_vm1, %v3535_v13  ;;  %2740 = vmatprep.mubr.msk.f32.mxu0 %vm411_vm1, %v3555_v0 }
 0x18b   : > { %2768 = vmatprep.mubr.msk.f32.mxu1 %vm411_vm1, %v3563_v8 }
 0x18d   : > { %2741 = vmatmul.mubr.msk.f32.gmra.mrb[28].mxu0 %vm411_vm1, %v3557_v1 }
 0x18e   : > { %2769 = vmatmul.mubr.msk.f32.gmra.mrb[28].mxu1 %vm411_vm1, %v3565_v17  ;;  %2743 = vmatprep.mubr.msk.f32.mxu0 %vm411_vm1, %v3591_v31 }
 0x18f   : > { %2771 = vmatprep.mubr.msk.f32.mxu1 %vm411_vm1, %v3599_v52 }
 0x191   : > { %2744 = vmatmul.mubr.msk.f32.gmra.mrb[30].mxu0 %vm411_vm1, %v3593_v26 }
 0x192   : > { %2772 = vmatmul.mubr.msk.f32.gmra.mrb[30].mxu1 %vm411_vm1, %v3601_v57 }
 0x1f8   : > { %v2568_v18 = vpop.f32.mrb[0].mxu0 }
 0x1f9   : > { %v1445_v39 = vsub.f32 %v2568_v18, %v3194_v15  ;;  %v2596_v11 = vpop.f32.mrb[0].mxu1  ;;  %v502_v32 = vpop.f32.mrb[1].mxu0 }
 0x1fa   : > { %v1453_v42 = vsub.f32 %v2596_v11, %v3206_v19  ;;  %v1444_v0 = vsub.f32 %v502_v32, %v3192_v14  ;;  %v631_v17 = vpop.f32.mrb[1].mxu1 }
 0x1fb   : > { %v1509_v31 = vmul.f32 %v1445_v39, %v1445_v39  ;;  %v1452_v8 = vsub.f32 %v631_v17, %v3196_v16 }
 0x1fc   : > { %v1517_v52 = vmul.f32 %v1453_v42, %v1453_v42  ;;  %v2571_v1 = vpop.f32.mrb[2].mxu0  ;;  %v1508_v15 = vmul.f32 %v1444_v0, %v1444_v0 }
 0x1fd   : > { %v1516_v38 = vmul.f32 %v1452_v8, %v1452_v8  ;;  %v1575_v26 = vsel %vm411_vm1, %v1509_v31, 0.0  ;;  %v1447_v57 = vsub.f32 %v2571_v1, %v3216_v22  ;;  %v512_v13 = vpop.f32.mrb[3].mxu0  ;;  %v2599_v21 = vpop.f32.mrb[2].mxu1 }
 0x1fe   : > { %1576 = vadd.xlane.f32.xlu1 %v1575_v26  ;;  %v1599_v18 = vsel %vm411_vm1, %v1517_v52, 0.0  ;;  %v1455_v19 = vsub.f32 %v2599_v21, %v3220_v24  ;;  %v641_v14 = vpop.f32.mrb[3].mxu1  ;;  %v1446_v17 = vsub.f32 %v512_v13, %v3208_v20  ;;  %v1572_v0 = vsel %vm411_vm1, %v1508_v15, 0.0 }
 0x1ff   : > { %1600 = vadd.xlane.f32.xlu0 %v1599_v18  ;;  %v1511_v39 = vmul.f32 %v1447_v57, %v1447_v57  ;;  %v1596_v8 = vsel %vm411_vm1, %v1516_v38, 0.0  ;;  %v1454_v1 = vsub.f32 %v641_v14, %v3218_v23 }
 0x200   : > { %v1519_v11 = vmul.f32 %v1455_v19, %v1455_v19  ;;  %v2574_v16 = vpop.f32.mrb[4].mxu0  ;;  %v1510_v20 = vmul.f32 %v1446_v17, %v1446_v17 }
 0x201   : > { %v2602_v31 = vpop.f32.mrb[4].mxu1  ;;  %v522_v32 = vpop.f32.mrb[5].mxu0  ;;  %v1581_v24 = vsel %vm411_vm1, %v1511_v39, 0.0  ;;  %v1449_v52 = vsub.f32 %v2574_v16, %v3240_v28  ;;  %v1518_v42 = vmul.f32 %v1454_v1, %v1454_v1 }
 0x202   : > { %1597 = vadd.xlane.f32.xlu1 %v1596_v8  ;;  %v651_v22 = vpop.f32.mrb[5].mxu1  ;;  %v1457_v26 = vsub.f32 %v2602_v31, %v3244_v30  ;;  %v1605_v21 = vsel %vm411_vm1, %v1519_v11, 0.0  ;;  %v1578_v14 = vsel %vm411_vm1, %v1510_v20, 0.0  ;;  %v1448_v30 = vsub.f32 %v522_v32, %v3238_v27 }
 0x203   : > { %1573 = vadd.xlane.f32.xlu0 %v1572_v0  ;;  %v1513_v15 = vmul.f32 %v1449_v52, %v1449_v52  ;;  %v1456_v19 = vsub.f32 %v651_v22, %v3242_v29  ;;  %v1602_v39 = vsel %vm411_vm1, %v1518_v42, 0.0  ;;  %v3080_v29 = vmov 0  }
 0x204   : > { %v2577_v13 = vpop.f32.mrb[6].mxu0  ;;  %v1521_v18 = vmul.f32 %v1457_v26, %v1457_v26  ;;  %v1512_v31 = vmul.f32 %v1448_v30, %v1448_v30  ;;  %3012 = vset.pattern.permute.xlu0 %v3080_v29  ;;  %3011 = vset.pattern.permute.xlu1 %v3080_v29 }
 0x205   : > { %v532_v38 = vpop.f32.mrb[7].mxu0  ;;  %v2605_v57 = vpop.f32.mrb[6].mxu1  ;;  %v1451_v11 = vsub.f32 %v2577_v13, %v3260_v34  ;;  %v1587_v16 = vsel %vm411_vm1, %v1513_v15, 0.0  ;;  %v1520_v8 = vmul.f32 %v1456_v19, %v1456_v19 }
 0x206   : > { %1582 = vadd.xlane.f32.xlu1 %v1581_v24  ;;  %v661_v23 = vpop.f32.mrb[7].mxu1  ;;  %v1611_v28 = vsel %vm411_vm1, %v1521_v18, 0.0  ;;  %v1459_v17 = vsub.f32 %v2605_v57, %v3264_v36  ;;  %v1450_v32 = vsub.f32 %v532_v38, %v3258_v33  ;;  %v1584_v34 = vsel %vm411_vm1, %v1512_v31, 0.0 }
 0x207   : > { %1606 = vadd.xlane.f32.xlu0 %v1605_v21  ;;  %v1515_v1 = vmul.f32 %v1451_v11, %v1451_v11  ;;  %v1608_v0 = vsel %vm411_vm1, %v1520_v8, 0.0  ;;  %v1458_v22 = vsub.f32 %v661_v23, %v3262_v35 }
 0x208   : > { %v1523_v27 = vmul.f32 %v1459_v17, %v1459_v17  ;;  %v1514_v26 = vmul.f32 %v1450_v32, %v1450_v32 }
 0x209   : > { %v1593_v36 = vsel %vm411_vm1, %v1515_v1, 0.0  ;;  %v1522_v21 = vmul.f32 %v1458_v22, %v1458_v22 }
 0x20a   : > { %1579 = vadd.xlane.f32.xlu1 %v1578_v14  ;;  %v1617_v24 = vsel %vm411_vm1, %v1523_v27, 0.0  ;;  %v1590_v38 = vsel %vm411_vm1, %v1514_v26, 0.0 }
 0x20b   : > { %1603 = vadd.xlane.f32.xlu0 %v1602_v39  ;;  %v1614_v23 = vsel %vm411_vm1, %v1522_v21, 0.0 }
 0x20e   : > { %1612 = vadd.xlane.f32.xlu1 %v1611_v28 }
 0x20f   : > { %1588 = vadd.xlane.f32.xlu0 %v1587_v16 }
 0x212   : > { %1609 = vadd.xlane.f32.xlu1 %v1608_v0 }
 0x213   : > { %1585 = vadd.xlane.f32.xlu0 %v1584_v34 }
 0x216   : > { %1594 = vadd.xlane.f32.xlu1 %v1593_v36 }
 0x217   : > { %1618 = vadd.xlane.f32.xlu0 %v1617_v24 }
 0x218   : > { %v2624_v52 = vpop.f32.mrb[8].mxu0 }
 0x219   : > { %v1461_v13 = vsub.f32 %v2624_v52, %v3285_v41  ;;  %v2652_v33 = vpop.f32.mrb[8].mxu1  ;;  %v760_v20 = vpop.f32.mrb[9].mxu0 }
 0x21a   : > { %v1469_v35 = vsub.f32 %v2652_v33, %v3291_v44  ;;  %v1460_v57 = vsub.f32 %v760_v20, %v3283_v40  ;;  %v889_v42 = vpop.f32.mrb[9].mxu1  ;;  %1591 = vadd.xlane.f32.xlu1 %v1590_v38 }
 0x21b   : > { %v1525_v18 = vmul.f32 %v1461_v13, %v1461_v13  ;;  %v1468_v15 = vsub.f32 %v889_v42, %v3289_v43  ;;  %1615 = vadd.xlane.f32.xlu0 %v1614_v23 }
 0x21c   : > { %v1533_v19 = vmul.f32 %v1469_v35, %v1469_v35  ;;  %v2627_v14 = vpop.f32.mrb[10].mxu0  ;;  %v1524_v11 = vmul.f32 %v1460_v57, %v1460_v57 }
 0x21d   : > { %v1623_v41 = vsel %vm411_vm1, %v1525_v18, 0.0  ;;  %v2655_v30 = vpop.f32.mrb[10].mxu1  ;;  %v1463_v39 = vsub.f32 %v2627_v14, %v3307_v48  ;;  %v770_v28 = vpop.f32.mrb[11].mxu0  ;;  %v1532_v44 = vmul.f32 %v1468_v15, %v1468_v15 }
 0x21e   : > { %v1647_v40 = vsel %vm411_vm1, %v1533_v19, 0.0  ;;  %v1471_v16 = vsub.f32 %v2655_v30, %v3311_v50  ;;  %v899_v17 = vpop.f32.mrb[11].mxu1  ;;  %v1462_v27 = vsub.f32 %v770_v28, %v3305_v47  ;;  %v1620_v32 = vsel %vm411_vm1, %v1524_v11, 0.0 }
 0x21f   : > { %1648 = vadd.xlane.f32.xlu1 %v1647_v40  ;;  %1624 = vadd.xlane.f32.xlu0 %v1623_v41  ;;  %v1527_v43 = vmul.f32 %v1463_v39, %v1463_v39  ;;  %v1644_v48 = vsel %vm411_vm1, %v1532_v44, 0.0  ;;  %v1470_v47 = vsub.f32 %v899_v17, %v3309_v49 }
 0x220   : > { %v1535_v8 = vmul.f32 %v1471_v16, %v1471_v16  ;;  %v2630_v31 = vpop.f32.mrb[12].mxu0  ;;  %v1526_v13 = vmul.f32 %v1462_v27, %v1462_v27 }
 0x221   : > { %v2658_v29 = vpop.f32.mrb[12].mxu1  ;;  %v780_v1 = vpop.f32.mrb[13].mxu0  ;;  %v1629_v36 = vsel %vm411_vm1, %v1527_v43, 0.0  ;;  %v1534_v38 = vmul.f32 %v1470_v47, %v1470_v47  ;;  %v1465_v57 = vsub.f32 %v2630_v31, %v3333_v54 }
 0x222   : > { %v1473_v0 = vsub.f32 %v2658_v29, %v3341_v56  ;;  %v909_v22 = vpop.f32.mrb[13].mxu1  ;;  %v1653_v34 = vsel %vm411_vm1, %v1535_v8, 0.0  ;;  %v1464_v24 = vsub.f32 %v780_v1, %v3331_v53  ;;  %v1626_v42 = vsel %vm411_vm1, %v1526_v13, 0.0 }
 0x223   : > { %1621 = vadd.xlane.f32.xlu1 %v1620_v32  ;;  %1645 = vadd.xlane.f32.xlu0 %v1644_v48  ;;  %v1472_v35 = vsub.f32 %v909_v22, %v3339_v55  ;;  %v1529_v15 = vmul.f32 %v1465_v57, %v1465_v57  ;;  %v1650_v19 = vsel %vm411_vm1, %v1534_v38, 0.0 }
 0x224   : > { %v1537_v50 = vmul.f32 %v1473_v0, %v1473_v0  ;;  %v2633_v26 = vpop.f32.mrb[14].mxu0  ;;  %v1528_v56 = vmul.f32 %v1464_v24, %v1464_v24 }
 0x225   : > { %v790_v21 = vpop.f32.mrb[15].mxu0  ;;  %v2661_v52 = vpop.f32.mrb[14].mxu1  ;;  %v1467_v53 = vsub.f32 %v2633_v26, %v3369_v60  ;;  %v1536_v18 = vmul.f32 %v1472_v35, %v1472_v35  ;;  %v1635_v30 = vsel %vm411_vm1, %v1529_v15, 0.0  ;;  %v4028_v35 = vld [vmem:[#allocation9_spill] sm:$0xff] }
 0x226   : > { %v919_v33 = vpop.f32.mrb[15].mxu1  ;;  %v1659_v20 = vsel %vm411_vm1, %v1537_v50, 0.0  ;;  %v1632_v49 = vsel %vm411_vm1, %v1528_v56, 0.0  ;;  %v1466_v23 = vsub.f32 %v790_v21, %v3367_v59  ;;  %v1475_v54 = vsub.f32 %v2661_v52, %v3377_v62 }
 0x227   : > { %1654 = vadd.xlane.f32.xlu1 %v1653_v34  ;;  %1630 = vadd.xlane.f32.xlu0 %v1629_v36  ;;  %v1531_v14 = vmul.f32 %v1467_v53, %v1467_v53  ;;  %v1474_v41 = vsub.f32 %v919_v33, %v3375_v61  ;;  %v1656_v60 = vsel %vm411_vm1, %v1536_v18, 0.0 }
 0x228   : > { %v1530_v55 = vmul.f32 %v1466_v23, %v1466_v23  ;;  %v1539_v39 = vmul.f32 %v1475_v54, %v1475_v54  ;;  %v4029_v23 = vld [vmem:[#allocation7_spill] sm:$0xff]  ;;  %v4030_v54 = vld [vmem:[#allocation8_spill] sm:$0xff] }
 0x229   : > { %v1538_v59 = vmul.f32 %v1474_v41, %v1474_v41  ;;  %v1641_v11 = vsel %vm411_vm1, %v1531_v14, 0.0 }
 0x22a   : > { %v1638_v28 = vsel %vm411_vm1, %v1530_v55, 0.0  ;;  %v1665_v62 = vsel %vm411_vm1, %v1539_v39, 0.0 }
 0x22b   : > { %1627 = vadd.xlane.f32.xlu1 %v1626_v42  ;;  %1660 = vadd.xlane.f32.xlu0 %v1659_v20  ;;  %v1662_v40 = vsel %vm411_vm1, %v1538_v59, 0.0 }
 0x22f   : > { %1651 = vadd.xlane.f32.xlu1 %v1650_v19  ;;  %1633 = vadd.xlane.f32.xlu0 %v1632_v49 }
 0x233   : > { %1636 = vadd.xlane.f32.xlu1 %v1635_v30  ;;  %1657 = vadd.xlane.f32.xlu0 %v1656_v60 }
 0x237   : > { %1639 = vadd.xlane.f32.xlu1 %v1638_v28  ;;  %1642 = vadd.xlane.f32.xlu0 %v1641_v11  ;;  %v4031_v11 = vld [vmem:[#allocation10_spill] sm:$0xff] }
 0x238   : > { %v2680_v44 = vpop.f32.mrb[16].mxu0 }
 0x239   : > { %v1477_v61 = vsub.f32 %v2680_v44, %v3399_v4  ;;  %v2708_v16 = vpop.f32.mrb[16].mxu1  ;;  %v1018_v17 = vpop.f32.mrb[17].mxu0 }
 0x23a   : > { %v1485_v8 = vsub.f32 %v2708_v16, %v3403_v6  ;;  %v1476_v43 = vsub.f32 %v1018_v17, %v3397_v3  ;;  %v1147_v31 = vpop.f32.mrb[17].mxu1  ;;  %v4032_v16 = vld [vmem:[#allocation11_spill] sm:$0xff] }
 0x23b   : > { %v1541_v29 = vmul.f32 %v1477_v61, %v1477_v61  ;;  %v1484_v1 = vsub.f32 %v1147_v31, %v3401_v5  ;;  %1663 = vadd.xlane.f32.xlu1 %v1662_v40  ;;  %1666 = vadd.xlane.f32.xlu0 %v1665_v62 }
 0x23c   : > { %v1549_v27 = vmul.f32 %v1485_v8, %v1485_v8  ;;  %v2683_v32 = vpop.f32.mrb[18].mxu0  ;;  %v1540_v50 = vmul.f32 %v1476_v43, %v1476_v43 }
 0x23d   : > { %v1671_v48 = vsel %vm411_vm1, %v1541_v29, 0.0  ;;  %v1479_v0 = vsub.f32 %v2683_v32, %v3419_v10  ;;  %v1028_v22 = vpop.f32.mrb[19].mxu0  ;;  %v2711_v4 = vpop.f32.mrb[18].mxu1  ;;  %v1548_v34 = vmul.f32 %v1484_v1, %v1484_v1 }
 0x23e   : > { %v1695_v6 = vsel %vm411_vm1, %v1549_v27, 0.0  ;;  %v1487_v3 = vsub.f32 %v2711_v4, %v3423_v12  ;;  %v1157_v36 = vpop.f32.mrb[19].mxu1  ;;  %v1478_v47 = vsub.f32 %v1028_v22, %v3417_v9  ;;  %v1668_v13 = vsel %vm411_vm1, %v1540_v50, 0.0 }
 0x23f   : > { %1672 = vadd.xlane.f32.xlu1 %v1671_v48  ;;  %1696 = vadd.xlane.f32.xlu0 %v1695_v6  ;;  %v1543_v5 = vmul.f32 %v1479_v0, %v1479_v0  ;;  %v1692_v10 = vsel %vm411_vm1, %v1548_v34, 0.0  ;;  %v1486_v18 = vsub.f32 %v1157_v36, %v4029_v23 }
 0x240   : > { %v1551_v24 = vmul.f32 %v1487_v3, %v1487_v3  ;;  %v2686_v26 = vpop.f32.mrb[20].mxu0  ;;  %v1542_v9 = vmul.f32 %v1478_v47, %v1478_v47  ;;  %v4033_v47 = vld [vmem:[#allocation12_spill] sm:$0xff] }
 0x241   : > { %v1038_v21 = vpop.f32.mrb[21].mxu0  ;;  %v2714_v52 = vpop.f32.mrb[20].mxu1  ;;  %v1677_v20 = vsel %vm411_vm1, %v1543_v5, 0.0  ;;  %v1550_v55 = vmul.f32 %v1486_v18, %v1486_v18  ;;  %v1481_v41 = vsub.f32 %v2686_v26, %v4030_v54 }
 0x242   : > { %v1480_v33 = vsub.f32 %v1038_v21, %v3443_v25  ;;  %v1167_v56 = vpop.f32.mrb[21].mxu1  ;;  %v1701_v38 = vsel %vm411_vm1, %v1551_v24, 0.0  ;;  %v1674_v30 = vsel %vm411_vm1, %v1542_v9, 0.0  ;;  %v1489_v44 = vsub.f32 %v2714_v52, %v4031_v11 }
 0x243   : > { %1693 = vadd.xlane.f32.xlu1 %v1692_v10  ;;  %1669 = vadd.xlane.f32.xlu0 %v1668_v13  ;;  %v1488_v57 = vsub.f32 %v1167_v56, %v4028_v35  ;;  %v1545_v28 = vmul.f32 %v1481_v41, %v1481_v41  ;;  %v1698_v40 = vsel %vm411_vm1, %v1550_v55, 0.0  ;;  %v4035_v56 = vld [vmem:[#allocation13_spill] sm:$0xff]  ;;  %v3765_v41 = vpop.xlane.xlu0 %309 }
 0x244   : > { %v1544_v12 = vmul.f32 %v1480_v33, %v1480_v33  ;;  %v2689_v42 = vpop.f32.mrb[22].mxu0  ;;  %v1553_v61 = vmul.f32 %v1489_v44, %v1489_v44 }
 0x245   : > { %v1048_v53 = vpop.f32.mrb[23].mxu0  ;;  %v2717_v49 = vpop.f32.mrb[22].mxu1  ;;  %v1552_v25 = vmul.f32 %v1488_v57, %v1488_v57  ;;  %v1483_v14 = vsub.f32 %v2689_v42, %v3481_v45  ;;  %v1683_v43 = vsel %vm411_vm1, %v1545_v28, 0.0  ;;  %v4038_v28 = vld [vmem:[#allocation6_spill] sm:$0xff] }
 0x246   : > { %v1177_v15 = vpop.f32.mrb[23].mxu1  ;;  %v1680_v19 = vsel %vm411_vm1, %v1544_v12, 0.0  ;;  %v1491_v59 = vsub.f32 %v2717_v49, %v3487_v51  ;;  %v1482_v17 = vsub.f32 %v1048_v53, %v4032_v16  ;;  %v1707_v1 = vsel %vm411_vm1, %v1553_v61, 0.0  ;;  %v4040_v16 = vld [vmem:[#allocation18_spill] sm:$0xff] }
 0x247   : > { %1678 = vadd.xlane.f32.xlu1 %v1677_v20  ;;  %1702 = vadd.xlane.f32.xlu0 %v1701_v38  ;;  %v1547_v60 = vmul.f32 %v1483_v14, %v1483_v14  ;;  %v1704_v39 = vsel %vm411_vm1, %v1552_v25, 0.0  ;;  %v1490_v8 = vsub.f32 %v1177_v15, %v3485_v46  ;;  %v4036_v25 = vld [vmem:[#allocation16_spill] sm:$0xff]  ;;  %v4037_v14 = vld [vmem:[#allocation17_spill] sm:$0xff]  ;;  %v311_v11 = vsub.f32 %v4038_v28, %v3765_v41 }
 0x248   : > { %v1555_v45 = vmul.f32 %v1491_v59, %v1491_v59  ;;  %v1546_v31 = vmul.f32 %v1482_v17, %v1482_v17 }
 0x249   : > { %v1689_v62 = vsel %vm411_vm1, %v1547_v60, 0.0  ;;  %v1554_v29 = vmul.f32 %v1490_v8, %v1490_v8  ;;  %v312_v8 = vmul.f32 1.442695, %v311_v11 }
 0x24a   : > { %v1713_v51 = vsel %vm411_vm1, %v1555_v45, 0.0  ;;  %v1686_v50 = vsel %vm411_vm1, %v1546_v31, 0.0 }
 0x24b   : > { %1681 = vadd.xlane.f32.xlu1 %v1680_v19  ;;  %1675 = vadd.xlane.f32.xlu0 %v1674_v30  ;;  %v1710_v34 = vsel %vm411_vm1, %v1554_v29, 0.0  ;;  %3013 = vpow2.f32 %v312_v8 }
 0x24f   : > { %1705 = vadd.xlane.f32.xlu1 %v1704_v39  ;;  %1699 = vadd.xlane.f32.xlu0 %v1698_v40 }
 0x253   : > { %1690 = vadd.xlane.f32.xlu1 %v1689_v62  ;;  %1684 = vadd.xlane.f32.xlu0 %v1683_v43  ;;  %v4039_v62 = vld [vmem:[#allocation20_spill] sm:$0xff] }
 0x257   : > { %1714 = vadd.xlane.f32.xlu1 %v1713_v51  ;;  %1708 = vadd.xlane.f32.xlu0 %v1707_v1  ;;  %v4041_v1 = vld [vmem:[#allocation15_spill] sm:$0xff] }
 0x258   : > { %v2736_v27 = vpop.f32.mrb[24].mxu0 }
 0x259   : > { %v1493_v32 = vsub.f32 %v2736_v27, %v3511_v63  ;;  %v2764_v48 = vpop.f32.mrb[24].mxu1  ;;  %v1276_v0 = vpop.f32.mrb[25].mxu0 }
 0x25a   : > { %v1501_v22 = vsub.f32 %v2764_v48, %v3515_v7  ;;  %v1492_v46 = vsub.f32 %v1276_v0, %v3509_v58  ;;  %v1405_v4 = vpop.f32.mrb[25].mxu1  ;;  %v4043_v0 = vld [vmem:[#allocation22_spill] sm:$0xff] }
 0x25b   : > { %v1557_v6 = vmul.f32 %v1493_v32, %v1493_v32  ;;  %v1500_v3 = vsub.f32 %v1405_v4, %v3513_v2  ;;  %1687 = vadd.xlane.f32.xlu1 %v1686_v50  ;;  %1711 = vadd.xlane.f32.xlu0 %v1710_v34  ;;  %v4034_v2 = vld [vmem:[#allocation14_spill] sm:$0xff]  ;;  %v4042_v32 = vld [vmem:[#allocation19_spill] sm:$0xff]  ;;  %v4044_v4 = vld [vmem:[#allocation21_spill] sm:$0xff] }
 0x25c   : > { %v1565_v36 = vmul.f32 %v1501_v22, %v1501_v22  ;;  %v2739_v5 = vpop.f32.mrb[26].mxu0  ;;  %v1556_v21 = vmul.f32 %v1492_v46, %v1492_v46 }
 0x25d   : > { %v1495_v63 = vsub.f32 %v2739_v5, %v3531_v37  ;;  %v1719_v24 = vsel %vm411_vm1, %v1557_v6, 0.0  ;;  %v1286_v26 = vpop.f32.mrb[27].mxu0  ;;  %v2767_v7 = vpop.f32.mrb[26].mxu1  ;;  %v1564_v58 = vmul.f32 %v1500_v3, %v1500_v3 }
 0x25e   : > { %v1743_v52 = vsel %vm411_vm1, %v1565_v36, 0.0  ;;  %v1494_v10 = vsub.f32 %v1286_v26, %v4033_v47  ;;  %v1415_v13 = vpop.f32.mrb[27].mxu1  ;;  %v1503_v33 = vsub.f32 %v2767_v7, %v4034_v2  ;;  %v1716_v42 = vsel %vm411_vm1, %v1556_v21, 0.0  ;;  %v3014_v21 = vpop.eup %3013 }
 0x25f   : > { %1744 = vadd.xlane.f32.xlu1 %v1743_v52  ;;  %1720 = vadd.xlane.f32.xlu0 %v1719_v24  ;;  %v1502_v12 = vsub.f32 %v1415_v13, %v4035_v56  ;;  %v1559_v20 = vmul.f32 %v1495_v63, %v1495_v63  ;;  %v1740_v53 = vsel %vm411_vm1, %v1564_v58, 0.0  ;;  %v314_v58 = vsel %vm307_vm3, %v3014_v21, 0.0  ;;  %v306_v13 = vld [vmem:[%s3975_s1] sm:$0xff] }
 0x260   : > { %v1558_v38 = vmul.f32 %v1494_v10, %v1494_v10  ;;  %v2742_v37 = vpop.f32.mrb[28].mxu0  ;;  %v1567_v9 = vmul.f32 %v1503_v33, %v1503_v33  ;;  %v4045_v52 = vlaneseq  ;;  %v4046_v33 = vld [vmem:[#allocation5_spill] sm:$0xff] }
 0x261   : > { %v2770_v35 = vpop.f32.mrb[28].mxu1  ;;  %v1296_v57 = vpop.f32.mrb[29].mxu0  ;;  %v1566_v23 = vmul.f32 %v1502_v12, %v1502_v12  ;;  %v1725_v15 = vsel %vm411_vm1, %v1559_v20, 0.0  ;;  %v1497_v19 = vsub.f32 %v2742_v37, %v4036_v25 }
 0x262   : > { %v1425_v49 = vpop.f32.mrb[29].mxu1  ;;  %v1722_v18 = vsel %vm411_vm1, %v1558_v38, 0.0  ;;  %v1749_v59 = vsel %vm411_vm1, %v1567_v9, 0.0  ;;  %v1505_v17 = vsub.f32 %v2770_v35, %v4040_v16  ;;  %v1496_v27 = vsub.f32 %v1296_v57, %v4041_v1 }
 0x263   : > { %1717 = vadd.xlane.f32.xlu1 %v1716_v42  ;;  %1741 = vadd.xlane.f32.xlu0 %v1740_v53  ;;  %v1504_v55 = vsub.f32 %v1425_v49, %v4037_v14  ;;  %v1561_v44 = vmul.f32 %v1497_v19, %v1497_v19  ;;  %v1746_v45 = vsel %vm411_vm1, %v1566_v23, 0.0  ;;  %v3787_v47 = vand.u32 127, %v4045_v52 }
 0x264   : > { %v2745_v54 = vpop.f32.mrb[30].mxu0  ;;  %v1569_v29 = vmul.f32 %v1505_v17, %v1505_v17  ;;  %v1560_v34 = vmul.f32 %v1496_v27, %v1496_v27 }
 0x265   : > { %v1306_v30 = vpop.f32.mrb[31].mxu0  ;;  %v2773_v60 = vpop.f32.mrb[30].mxu1  ;;  %v1568_v40 = vmul.f32 %v1504_v55, %v1504_v55  ;;  %v1499_v61 = vsub.f32 %v2745_v54, %v4039_v62  ;;  %v1731_v51 = vsel %vm411_vm1, %v1561_v44, 0.0  ;;  %v1832_v10 = vadd.s32 4294967288, %v3787_v47 }
 0x266   : > { %v1435_v39 = vpop.f32.mrb[31].mxu1  ;;  %v1498_v48 = vsub.f32 %v1306_v30, %v4042_v32  ;;  %v1507_v22 = vsub.f32 %v2773_v60, %v4043_v0  ;;  %v1755_v3 = vsel %vm411_vm1, %v1569_v29, 0.0  ;;  %v1728_v63 = vsel %vm411_vm1, %v1560_v34, 0.0 }
 0x267   : > { %1723 = vadd.xlane.f32.xlu1 %v1722_v18  ;;  %1726 = vadd.xlane.f32.xlu0 %v1725_v15  ;;  %v1563_v43 = vmul.f32 %v1499_v61, %v1499_v61  ;;  %v1752_v31 = vsel %vm411_vm1, %v1568_v40, 0.0  ;;  %v1506_v50 = vsub.f32 %v1435_v39, %v4044_v4  ;;  %v3794_v56 = vsub.s32 %v1832_v10, %v4046_v33 }
 0x268   : > { %v1562_v6 = vmul.f32 %v1498_v48, %v1498_v48  ;;  %v1571_v36 = vmul.f32 %v1507_v22, %v1507_v22  ;;  %v3798_v20 = vsub.s32 %v3787_v47, %v4046_v33  ;;  %v1839_v42 = vadd.s32 4294967280, %v3787_v47 }
 0x269   : > { %v1737_v46 = vsel %vm411_vm1, %v1563_v43, 0.0  ;;  %v1570_v5 = vmul.f32 %v1506_v50, %v1506_v50  ;;  %v1846_v9 = vadd.s32 4294967272, %v3787_v47  ;;  %v1853_v60 = vadd.s32 4294967264, %v3787_v47 }
 0x26a   : > { %v1734_v24 = vsel %vm411_vm1, %v1562_v6, 0.0  ;;  %v1761_v7 = vsel %vm411_vm1, %v1571_v36, 0.0  ;;  %v3809_v19 = vsub.s32 %v1839_v42, %v4046_v33  ;;  %v1860_v28 = vadd.s32 4294967256, %v3787_v47 }
 0x26b   : > { %1747 = vadd.xlane.f32.xlu1 %v1746_v45  ;;  %1750 = vadd.xlane.f32.xlu0 %v1749_v59  ;;  %v1758_v26 = vsel %vm411_vm1, %v1570_v5, 0.0  ;;  %v3812_v14 = vsub.s32 %v1846_v9, %v4046_v33  ;;  %v3824_v16 = vsub.s32 %v1853_v60, %v4046_v33  ;;  %v1867_v29 = vadd.s32 4294967248, %v3787_v47 }
 0x26c   : > { %v3828_v8 = vsub.s32 %v1860_v28, %v4046_v33  ;;  %v1874_v32 = vadd.s32 4294967240, %v3787_v47 }
 0x26d   : > { %v3841_v6 = vsub.s32 %v1867_v29, %v4046_v33 }
 0x26f   : > { %1732 = vadd.xlane.f32.xlu1 %v1731_v51  ;;  %1753 = vadd.xlane.f32.xlu0 %v1752_v31 }
 0x273   : > { %1756 = vadd.xlane.f32.xlu1 %v1755_v3  ;;  %1738 = vadd.xlane.f32.xlu0 %v1737_v46  ;;  %v3844_v3 = vsub.s32 %v1874_v32, %v4046_v33 }
 0x277   : > { %1729 = vadd.xlane.f32.xlu1 %v1728_v63  ;;  %1735 = vadd.xlane.f32.xlu0 %v1734_v24 }
 0x27b   : > { %1759 = vadd.xlane.f32.xlu1 %v1758_v26  ;;  %1762 = vadd.xlane.f32.xlu0 %v1761_v7 }
 0x27f   : > { %315 = vadd.xlane.f32.xlu0 %v314_v58 }
 0x28b   : > { %v1577_v2 = vpop.xlane.xlu1 %1576 }
 0x28c   : > { %v1601_v12 = vpop.xlane.xlu0 %1600  ;;  %323 = vperm.xlu1 %3011, %v306_v13   ;;  %v1836_v53 = vrot.slane %v1577_v2, %v3794_v56 }
 0x28d   : > { %v1888_v37 = vrot.slane %v1601_v12, %v3794_v56 }
 0x28f   : > { %v1598_v38 = vpop.xlane.xlu1 %1597 }
 0x290   : > { %v1884_v35 = vrot.slane %v1598_v38, %v3798_v20  ;;  %v1574_v57 = vpop.xlane.xlu0 %1573 }
 0x291   : > { %v1831_v49 = vrot.slane %v1574_v57, %v3798_v20 }
 0x292   : > { %v1889_v23 = vsel %vm1837_vm4, %v1888_v37, %v1884_v35 }
 0x293   : > { %v1838_v18 = vsel %vm1837_vm4, %v1836_v53, %v1831_v49  ;;  %v1583_v15 = vpop.xlane.xlu1 %1582 }
 0x294   : > { %v1607_v25 = vpop.xlane.xlu0 %1606  ;;  %v1850_v39 = vrot.slane %v1583_v15, %v3812_v14 }
 0x295   : > { %v1898_v11 = vrot.slane %v1607_v25, %v3812_v14 }
 0x297   : > { %v1580_v55 = vpop.xlane.xlu1 %1579 }
 0x298   : > { %v1843_v54 = vrot.slane %v1580_v55, %v3809_v19  ;;  %v1604_v30 = vpop.xlane.xlu0 %1603 }
 0x299   : > { %v1893_v59 = vrot.slane %v1604_v30, %v3809_v19 }
 0x29a   : > { %v1845_v44 = vsel %vm1844_vm5, %v1843_v54, %v1838_v18 }
 0x29b   : > { %v1894_v40 = vsel %vm1844_vm5, %v1893_v59, %v1889_v23  ;;  %v1613_v45 = vpop.xlane.xlu1 %1612  ;;  %v1852_v62 = vsel %vm1851_vm6, %v1850_v39, %v1845_v44 }
 0x29c   : > { %v1589_v61 = vpop.xlane.xlu0 %1588  ;;  %v1899_v17 = vsel %vm1851_vm6, %v1898_v11, %v1894_v40  ;;  %v1908_v1 = vrot.slane %v1613_v45, %v3828_v8 }
 0x29d   : > { %v1864_v48 = vrot.slane %v1589_v61, %v3828_v8 }
 0x29f   : > { %v1610_v43 = vpop.xlane.xlu1 %1609 }
 0x2a0   : > { %v1903_v51 = vrot.slane %v1610_v43, %v3824_v16  ;;  %v1586_v31 = vpop.xlane.xlu0 %1585 }
 0x2a1   : > { %v1857_v27 = vrot.slane %v1586_v31, %v3824_v16 }
 0x2a2   : > { %v1904_v0 = vsel %vm1858_vm7, %v1903_v51, %v1899_v17 }
 0x2a3   : > { %v1859_v22 = vsel %vm1858_vm7, %v1857_v27, %v1852_v62  ;;  %v1595_v46 = vpop.xlane.xlu1 %1594  ;;  %v1909_v4 = vsel %vm1865_vm8, %v1908_v1, %v1904_v0 }
 0x2a4   : > { %v1619_v50 = vpop.xlane.xlu0 %1618  ;;  %v1866_v34 = vsel %vm1865_vm8, %v1864_v48, %v1859_v22  ;;  %v1878_v24 = vrot.slane %v1595_v46, %v3844_v3 }
 0x2a5   : > { %v1918_v7 = vrot.slane %v1619_v50, %v3844_v3 }
 0x2a7   : > { %v1592_v36 = vpop.xlane.xlu1 %1591 }
 0x2a8   : > { %v1871_v5 = vrot.slane %v1592_v36, %v3841_v6  ;;  %v1616_v63 = vpop.xlane.xlu0 %1615 }
 0x2a9   : > { %v1913_v26 = vrot.slane %v1616_v63, %v3841_v6 }
 0x2aa   : > { %v1873_v21 = vsel %vm1872_vm9, %v1871_v5, %v1866_v34 }
 0x2ab   : > { %v1880_v58 = vsel %vm1879_vm10, %v1878_v24, %v1873_v21  ;;  %v1914_v52 = vsel %vm1872_vm9, %v1913_v26, %v1909_v4 }
 0x2ac   : > { %v1919_v10 = vsel %vm1879_vm10, %v1918_v7, %v1914_v52  ;;  %v1649_v13 = vpop.xlane.xlu1 %1648  ;;  %v1625_v2 = vpop.xlane.xlu0 %1624 }
 0x2ad   : > { %v2155_v33 = vsel %vm2154_vm11, %v1919_v10, %v1880_v58  ;;  %v1966_v37 = vrot.slane %v1649_v13, %v3794_v56  ;;  %v1927_v35 = vrot.slane %v1625_v2, %v3794_v56 }
 0x2b0   : > { %v1622_v12 = vpop.xlane.xlu1 %1621  ;;  %v1646_v38 = vpop.xlane.xlu0 %1645 }
 0x2b1   : > { %v1923_v57 = vrot.slane %v1622_v12, %v3798_v20  ;;  %v1962_v42 = vrot.slane %v1646_v38, %v3798_v20 }
 0x2b3   : > { %v1928_v53 = vsel %vm1837_vm4, %v1927_v35, %v1923_v57  ;;  %v1967_v49 = vsel %vm1837_vm4, %v1966_v37, %v1962_v42 }
 0x2b4   : > { %v1655_v9 = vpop.xlane.xlu1 %1654  ;;  %v1631_v23 = vpop.xlane.xlu0 %1630 }
 0x2b5   : > { %v1937_v55 = vrot.slane %v1631_v23, %v3812_v14  ;;  %v1976_v11 = vrot.slane %v1655_v9, %v3812_v14 }
 0x2b8   : > { %v1628_v18 = vpop.xlane.xlu1 %1627  ;;  %v1661_v15 = vpop.xlane.xlu0 %1660 }
 0x2b9   : > { %v1932_v25 = vrot.slane %v1628_v18, %v3809_v19  ;;  %v1986_v51 = vrot.slane %v1661_v15, %v3828_v8 }
 0x2bb   : > { %v1933_v54 = vsel %vm1844_vm5, %v1932_v25, %v1928_v53 }
 0x2bc   : > { %v1652_v30 = vpop.xlane.xlu1 %1651  ;;  %v1938_v60 = vsel %vm1851_vm6, %v1937_v55, %v1933_v54  ;;  %v1634_v39 = vpop.xlane.xlu0 %1633 }
 0x2bd   : > { %v1971_v59 = vrot.slane %v1652_v30, %v3809_v19  ;;  %v1942_v28 = vrot.slane %v1634_v39, %v3824_v16 }
 0x2bf   : > { %v1972_v44 = vsel %vm1844_vm5, %v1971_v59, %v1967_v49  ;;  %v1943_v40 = vsel %vm1858_vm7, %v1942_v28, %v1938_v60 }
 0x2c0   : > { %v1637_v45 = vpop.xlane.xlu1 %1636  ;;  %v1977_v62 = vsel %vm1851_vm6, %v1976_v11, %v1972_v44  ;;  %v1658_v61 = vpop.xlane.xlu0 %1657 }
 0x2c1   : > { %v1947_v17 = vrot.slane %v1637_v45, %v3828_v8  ;;  %v1981_v43 = vrot.slane %v1658_v61, %v3824_v16 }
 0x2c3   : > { %v1948_v31 = vsel %vm1865_vm8, %v1947_v17, %v1943_v40  ;;  %v1982_v29 = vsel %vm1858_vm7, %v1981_v43, %v1977_v62 }
 0x2c4   : > { %v1640_v1 = vpop.xlane.xlu1 %1639  ;;  %v1643_v27 = vpop.xlane.xlu0 %1642  ;;  %v1987_v32 = vsel %vm1865_vm8, %v1986_v51, %v1982_v29 }
 0x2c5   : > { %v1952_v48 = vrot.slane %v1640_v1, %v3841_v6  ;;  %v1957_v0 = vrot.slane %v1643_v27, %v3844_v3 }
 0x2c7   : > { %v1953_v22 = vsel %vm1872_vm9, %v1952_v48, %v1948_v31 }
 0x2c8   : > { %v1958_v46 = vsel %vm1879_vm10, %v1957_v0, %v1953_v22  ;;  %v1664_v4 = vpop.xlane.xlu1 %1663  ;;  %v1667_v50 = vpop.xlane.xlu0 %1666 }
 0x2c9   : > { %v2157_v34 = vsel %vm2156_vm12, %v1958_v46, %v2155_v33  ;;  %v1991_v36 = vrot.slane %v1664_v4, %v3841_v6  ;;  %v1996_v5 = vrot.slane %v1667_v50, %v3844_v3 }
 0x2cb   : > { %v1992_v63 = vsel %vm1872_vm9, %v1991_v36, %v1987_v32 }
 0x2cc   : > { %v1997_v24 = vsel %vm1879_vm10, %v1996_v5, %v1992_v63  ;;  %v1673_v26 = vpop.xlane.xlu1 %1672  ;;  %v1697_v7 = vpop.xlane.xlu0 %1696 }
 0x2cd   : > { %v3884_v21 = vsel %vm2158_vm13, %v1997_v24, %v2157_v34  ;;  %v2005_v60 = vrot.slane %v1673_v26, %v3794_v56  ;;  %v2044_v40 = vrot.slane %v1697_v7, %v3794_v56 }
 0x2d0   : > { %v1694_v58 = vpop.xlane.xlu1 %1693  ;;  %v1670_v52 = vpop.xlane.xlu0 %1669 }
 0x2d1   : > { %v2001_v25 = vrot.slane %v1670_v52, %v3798_v20  ;;  %v2040_v39 = vrot.slane %v1694_v58, %v3798_v20 }
 0x2d3   : > { %v2006_v59 = vsel %vm1837_vm4, %v2005_v60, %v2001_v25  ;;  %v2045_v61 = vsel %vm1837_vm4, %v2044_v40, %v2040_v39 }
 0x2d4   : > { %v1679_v10 = vpop.xlane.xlu1 %1678  ;;  %v1703_v13 = vpop.xlane.xlu0 %1702 }
 0x2d5   : > { %v2015_v62 = vrot.slane %v1679_v10, %v3812_v14  ;;  %v2054_v1 = vrot.slane %v1703_v13, %v3812_v14 }
 0x2d8   : > { %v1682_v2 = vpop.xlane.xlu1 %1681  ;;  %v1676_v12 = vpop.xlane.xlu0 %1675 }
 0x2d9   : > { %v2010_v30 = vrot.slane %v1676_v12, %v3809_v19  ;;  %v2020_v27 = vrot.slane %v1682_v2, %v3824_v16 }
 0x2db   : > { %v2011_v45 = vsel %vm1844_vm5, %v2010_v30, %v2006_v59 }
 0x2dc   : > { %v1706_v33 = vpop.xlane.xlu1 %1705  ;;  %v1700_v38 = vpop.xlane.xlu0 %1699  ;;  %v2016_v17 = vsel %vm1851_vm6, %v2015_v62, %v2011_v45 }
 0x2dd   : > { %v2049_v28 = vrot.slane %v1700_v38, %v3809_v19  ;;  %v2059_v48 = vrot.slane %v1706_v33, %v3824_v16  ;;  %v2021_v46 = vsel %vm1858_vm7, %v2020_v27, %v2016_v17 }
 0x2df   : > { %v2050_v43 = vsel %vm1844_vm5, %v2049_v28, %v2045_v61 }
 0x2e0   : > { %v1691_v37 = vpop.xlane.xlu1 %1690  ;;  %v1685_v35 = vpop.xlane.xlu0 %1684  ;;  %v2055_v22 = vsel %vm1851_vm6, %v2054_v1, %v2050_v43 }
 0x2e1   : > { %v2025_v51 = vrot.slane %v1685_v35, %v3828_v8  ;;  %v2035_v7 = vrot.slane %v1691_v37, %v3844_v3  ;;  %v2060_v10 = vsel %vm1858_vm7, %v2059_v48, %v2055_v22 }
 0x2e3   : > { %v2026_v34 = vsel %vm1865_vm8, %v2025_v51, %v2021_v46 }
 0x2e4   : > { %v3886_v57 = vpop.xlane.xlu1 %1714  ;;  %v1709_v42 = vpop.xlane.xlu0 %1708 }
 0x2e5   : > { %v2064_v4 = vrot.slane %v1709_v42, %v3828_v8 }
 0x2e7   : > { %v2065_v33 = vsel %vm1865_vm8, %v2064_v4, %v2060_v10 }
 0x2e8   : > { %v1688_v53 = vpop.xlane.xlu1 %1687  ;;  %v1712_v49 = vpop.xlane.xlu0 %1711 }
 0x2e9   : > { %v2030_v32 = vrot.slane %v1688_v53, %v3841_v6  ;;  %v2069_v36 = vrot.slane %v1712_v49, %v3841_v6 }
 0x2eb   : > { %v2031_v58 = vsel %vm1872_vm9, %v2030_v32, %v2026_v34  ;;  %v2070_v37 = vsel %vm1872_vm9, %v2069_v36, %v2065_v33 }
 0x2ec   : > { %v1745_v9 = vpop.xlane.xlu1 %1744  ;;  %v1721_v23 = vpop.xlane.xlu0 %1720  ;;  %v2036_v38 = vsel %vm1879_vm10, %v2035_v7, %v2031_v58 }
 0x2ed   : > { %v2083_v5 = vrot.slane %v1721_v23, %v3794_v56  ;;  %v2122_v13 = vrot.slane %v1745_v9, %v3794_v56  ;;  %v2074_v56 = vrot.slane %v3886_v57, %v3844_v3  ;;  %v2161_v57 = vsel %vm2160_vm14, %v2036_v38, %v3884_v21 }
 0x2f0   : > { %v1718_v18 = vpop.xlane.xlu1 %1717  ;;  %v1742_v15 = vpop.xlane.xlu0 %1741 }
 0x2f1   : > { %v2079_v0 = vrot.slane %v1718_v18, %v3798_v20  ;;  %v2118_v63 = vrot.slane %v1742_v15, %v3798_v20 }
 0x2f3   : > { %v2084_v2 = vsel %vm1837_vm4, %v2083_v5, %v2079_v0  ;;  %v2123_v35 = vsel %vm1837_vm4, %v2122_v13, %v2118_v63 }
 0x2f4   : > { %v1724_v55 = vpop.xlane.xlu1 %1723  ;;  %v1727_v54 = vpop.xlane.xlu0 %1726 }
 0x2f5   : > { %v2088_v50 = vrot.slane %v1724_v55, %v3809_v19  ;;  %v2093_v12 = vrot.slane %v1727_v54, %v3812_v14 }
 0x2f7   : > { %v2089_v20 = vsel %vm1844_vm5, %v2088_v50, %v2084_v2 }
 0x2f8   : > { %v1748_v11 = vpop.xlane.xlu1 %1747  ;;  %v1751_v44 = vpop.xlane.xlu0 %1750  ;;  %v2094_v18 = vsel %vm1851_vm6, %v2093_v12, %v2089_v20 }
 0x2f9   : > { %v2127_v52 = vrot.slane %v1748_v11, %v3809_v19  ;;  %v2132_v19 = vrot.slane %v1751_v44, %v3812_v14  ;;  %v2075_v14 = vsel %vm1879_vm10, %v2074_v56, %v2070_v37 }
 0x2fa   : > { %v2163_v45 = vsel %vm2162_vm15, %v2075_v14, %v2161_v57 }
 0x2fb   : > { %v2128_v49 = vsel %vm1844_vm5, %v2127_v52, %v2123_v35  ;;  %vm331_vm5 = vcmask 7168  }
 0x2fc   : > { %v1733_v31 = vpop.xlane.xlu1 %1732  ;;  %v1754_v29 = vpop.xlane.xlu0 %1753  ;;  %v2133_v30 = vsel %vm1851_vm6, %v2132_v19, %v2128_v49  ;;  %vm345_vm6 = vcmask 8200  }
 0x2fd   : > { %v2137_v9 = vrot.slane %v1754_v29, %v3824_v16  ;;  %v2103_v15 = vrot.slane %v1733_v31, %v3828_v8 }
 0x300   : > { %v1757_v24 = vpop.xlane.xlu1 %1756  ;;  %v1739_v26 = vpop.xlane.xlu0 %1738 }
 0x301   : > { %v2142_v25 = vrot.slane %v1757_v24, %v3828_v8  ;;  %v2138_v8 = vsel %vm1858_vm7, %v2137_v9, %v2133_v30 }
 0x303   : > { %v2143_v40 = vsel %vm1865_vm8, %v2142_v25, %v2138_v8 }
 0x304   : > { %v1730_v42 = vpop.xlane.xlu1 %1729  ;;  %v1736_v53 = vpop.xlane.xlu0 %1735 }
 0x305   : > { %v2098_v23 = vrot.slane %v1730_v42, %v3824_v16  ;;  %v2108_v54 = vrot.slane %v1736_v53, %v3841_v6  ;;  %v2113_v16 = vrot.slane %v1739_v26, %v3844_v3 }
 0x307   : > { %v2099_v55 = vsel %vm1858_vm7, %v2098_v23, %v2094_v18  ;;  %vm2191_vm7 = vcmask 16400  }
 0x308   : > { %v2104_v60 = vsel %vm1865_vm8, %v2103_v15, %v2099_v55  ;;  %v1760_v39 = vpop.xlane.xlu1 %1759  ;;  %v1763_v59 = vpop.xlane.xlu0 %1762 }
 0x309   : > { %v2109_v28 = vsel %vm1872_vm9, %v2108_v54, %v2104_v60  ;;  %v2147_v11 = vrot.slane %v1760_v39, %v3841_v6  ;;  %v2152_v44 = vrot.slane %v1763_v59, %v3844_v3  ;;  %v3019_v3 = vld [vmem:[%s3974_s0] sm:$0xff] }
 0x30a   : > { %v2114_v21 = vsel %vm1879_vm10, %v2113_v16, %v2109_v28 }
 0x30b   : > { %v2148_v62 = vsel %vm1872_vm9, %v2147_v11, %v2143_v40  ;;  %v2165_v61 = vsel %vm2164_vm0, %v2114_v21, %v2163_v45 }
 0x30c   : > { %v324_v17 = vpop.permute.xlu1 %323  ;;  %v2153_v43 = vsel %vm1879_vm10, %v2152_v44, %v2148_v62  ;;  %v316_v1 = vpop.xlane.xlu0 %315 }
 0x30d   : > { %vm325_vm4 = vcmp.eq.s32.totalorder %v3787_v47, %v324_v17  ;;  %v2167_v51 = vsel %vm2166_vm2, %v2153_v43, %v2165_v61  ;;  %3015 = vlog2.f32 %v316_v1 }
 0x30e   : > { %v2169_v6 = vsel %vm411_vm1, %v2167_v51, 0.0  ;;  %v326_v31 = vsel %vm325_vm4, %v3019_v3, 0.0 }
 0x30f   : > { %2170 = vadd.xlane.f32.xlu0 %v2169_v6  ;;  %v327_v29 = vsel %vm307_vm3, %v326_v31, 0.0 }
 0x313   : > { %328 = vadd.xlane.f32.xlu0 %v327_v29 }
 0x317   : > { %v3016_v27 = vpop.eup %3015 }
 0x318   : > { %v318_v32 = vmul.f32 0.6931472, %v3016_v27 }
 0x31a   : > { %v319_v47 = vadd.f32 %v318_v32, %v3765_v41 }
 0x39c   : > { %v2171_v48 = vpop.xlane.xlu0 %2170 }
 0x39d   : > { %3017 = vrsqrt.f32 %v2171_v48  ;;  %vm2174_vm1 = vcmp.eq.f32.partialorder %v2171_v48, inf  ;;  %v2177_v34 = vand.u32 2147483648, %v2171_v48  ;;  %vm2176_vm3 = vcmp.eq.f32.partialorder %v2171_v48, 0.0 }
 0x3a0   : > { %v329_v0 = vpop.xlane.xlu0 %328 }
 0x3a1   : > { %v330_v22 = vsub.f32 %v319_v47, %v329_v0 }
 0x3a3   : > { %v332_v46 = vsel %vm331_vm5, %v330_v22, 0.0 }
 0x3a4   : > { %333 = vadd.xlane.f32.xlu0 %v332_v46 }
 0x3a7   : > { %v3018_v4 = vpop.eup %3017 }
 0x3a8   : > { %v2173_v50 = vmul.f32 %v3018_v4, %v2171_v48 }
 0x3aa   : > { %v2175_v36 = vsel %vm2174_vm1, %v2171_v48, %v2173_v50 }
 0x3ab   : > { %v2178_v5 = vsel %vm2176_vm3, %v2177_v34, %v2175_v36 }
 0x3ac   : > { %v2179_v63 = vsel %vm331_vm5, %v2178_v5, 0.0 }
 0x3ad   : > { %2180 = vadd.xlane.f32.xlu1 %v2179_v63 }
 0x431   : > { %v334_v24 = vpop.xlane.xlu0 %333 }
 0x432   : > { %v335_v26 = vrot.slane %v334_v24, 4 }
 0x434   : > { %v336_v7 = vadd.f32 %v335_v26, %v334_v24 }
 0x436   : > { %v337_v58 = vrot.slane %v336_v7, 2 }
 0x438   : > { %v338_v52 = vadd.f32 %v337_v58, %v336_v7 }
 0x43a   : > { %v2181_v41 = vpop.xlane.xlu1 %2180  ;;  %v339_v10 = vrot.slane %v338_v52, 1 }
 0x43b   : > { %v2182_v13 = vrot.slane %v2181_v41, 4 }
 0x43c   : > { %v340_v2 = vadd.f32 %v339_v10, %v338_v52 }
 0x43d   : > { %v2183_v12 = vadd.f32 %v2182_v13, %v2181_v41 }
 0x43e   : > { %2968 = vpush %v340_v2 }
 0x43f   : > { %v2184_v33 = vrot.slane %v2183_v12, 2 }
 0x441   : > { %v2185_v20 = vadd.f32 %v2184_v33, %v2183_v12 }
 0x443   : > { %v2186_v38 = vrot.slane %v2185_v20, 1 }
 0x445   : > { %v2187_v37 = vadd.f32 %v2186_v38, %v2185_v20 }
 0x447   : > { %2970 = vpush %v2187_v37 }
 0x46f   : > { %s2969_s11 = spop %2968 }
 0x470   : > { %v342_v35 = vstv %s2969_s11 }
 0x471   : > { %v344_v19 = vmul.f32 0.125, %v342_v35 }
 0x473   : > { %346 = vst.msk [vmem:[%s3181_s27] sm:$0x1] %vm345_vm6, %v344_v19 }
 0x478   : > { %s2971_s12 = spop %2970 }
 0x479   : > { %v2189_v42 = vstv %s2971_s12 }
 0x47a   : > { %v2190_v53 = vmul.f32 0.125, %v2189_v42 }
 0x47c   : > { %2192 = vst.msk [vmem:[%s3181_s27] sm:$0x1] %vm2191_vm7, %v2190_v53 }
 0x47d PF: > { %vm2195_vm8 = vcmask 0   ;;  %v4047_v49 = vstv %s3189_s30 }
 0x483   : > { %v2193_v56 = vld [vmem:[%s3181_s27] sm:$0x1] }
 0x484   : > { %v2194_v9 = vadd.f32 %v2193_v56, %v4047_v49 }
 0x486   : > { %2196 = vst.msk [vmem:[%s3181_s27] sm:$0x1] %vm2195_vm8, %v2194_v9 }
 0x487 PF: > { %s16_s20 = sadd.s32 1, %s3074_s20   ;;  %s4048_s18 = smov %s3070_s19 }
 0x488   : > { %p13_p6 = scmp.ge.s32.totalorder %s16_s20, 4   ;;  %s4049_s19 = smov %s4051_s22 }
 0x48a   :  { %15 = sbr.rel (!%p13_p6) target bundleno = 2 (0x2), region = 86 }
 0x491   :  { %2216 = vsyncpa [#allocation3], 1 }
 0x492   :  { %2218 = vsyncpa [#allocation3 + $0x1], 1 }

</bundles_post_ra>
